<compile_context>
chip_gen: v5e
topology: v5e:2x2
jax: 0.10.0
libtpu: 0.0.40
codegen_flags: <defaults>
</compile_context>

<pallas_src>
import functools
import math

import jax
import jax.numpy as jnp
from jax.experimental import pallas as pl
from jax.experimental.pallas import tpu as pltpu

# ----------------------- small synthetic ChemBERTa config -----------------------
VOCAB = 64
HIDDEN = 32
N_LAYERS = 2
N_HEADS = 4
HEAD_DIM = HIDDEN // N_HEADS
INTERMEDIATE = 64
MAX_POS = 16
N_LBS = 2
N_TASKS = 3
N_OUT = N_LBS * N_TASKS
LN_EPS = 1e-12

# --------------------------- weight-slab layout constants -----------------------
BAND = 128                       # 128-lane-aligned column band per weight class
MAT_ROWS = max(HIDDEN, INTERMEDIATE)
QKV_OFF = 0 * BAND               # wqkv  (HIDDEN, 3*HIDDEN)
WO_OFF = 1 * BAND                # wo    (HIDDEN, HIDDEN)
W1_OFF = 2 * BAND                # w1    (HIDDEN, INTERMEDIATE)
W2_OFF = 3 * BAND                # w2    (INTERMEDIATE, HIDDEN)
MAT_COLS = 4 * BAND

VEC_COLS = 128                   # per-layer vector slab: 8 rows x 128 lanes
(V_BQKV, V_BO, V_LN1G, V_LN1B, V_B1, V_B2, V_LN2G, V_LN2B) = range(8)

OUT_PAD = 128                    # lane-dense padded logits width


# --------------------------------- Pallas kernel --------------------------------
def _layernorm(x, g, b):
    mu = jnp.mean(x, axis=-1, keepdims=True)
    xc = x - mu
    var = jnp.mean(xc * xc, axis=-1, keepdims=True)
    return xc * jax.lax.rsqrt(var + LN_EPS) * g + b


def _chemberta_kernel(emb_ref, mask_ref, lmat_ref, lvec_ref, gmat_ref, gvec_ref,
                      out_ref, *, bt, s):
    """Whole ChemBERTa forward for a block of `bt` examples (grid axis = batch blocks)."""
    # Embedding LayerNorm over the whole (bt*s, H) row block.
    x = _layernorm(emb_ref[...], gvec_ref[0:1, :HIDDEN], gvec_ref[1:2, :HIDDEN])

    # Hoisted additive-mask broadcasts: one (s, s) bias per example per invocation.
    bias2d = [jnp.broadcast_to(mask_ref[bi], (s, s)) for bi in range(bt)]

    for li in range(N_LAYERS):                                     # unrolled (tiny L)
        wqkv = lmat_ref[li, :HIDDEN, QKV_OFF:QKV_OFF + 3 * HIDDEN]
        wo = lmat_ref[li, :HIDDEN, WO_OFF:WO_OFF + HIDDEN]
        w1 = lmat_ref[li, :HIDDEN, W1_OFF:W1_OFF + INTERMEDIATE]
        w2 = lmat_ref[li, :INTERMEDIATE, W2_OFF:W2_OFF + HIDDEN]
        bqkv = lvec_ref[li, V_BQKV:V_BQKV + 1, :3 * HIDDEN]
        bo = lvec_ref[li, V_BO:V_BO + 1, :HIDDEN]
        ln1g = lvec_ref[li, V_LN1G:V_LN1G + 1, :HIDDEN]
        ln1b = lvec_ref[li, V_LN1B:V_LN1B + 1, :HIDDEN]
        b1 = lvec_ref[li, V_B1:V_B1 + 1, :INTERMEDIATE]
        b2 = lvec_ref[li, V_B2:V_B2 + 1, :HIDDEN]
        ln2g = lvec_ref[li, V_LN2G:V_LN2G + 1, :HIDDEN]
        ln2b = lvec_ref[li, V_LN2B:V_LN2B + 1, :HIDDEN]

        # --- self attention: fused QKV projection over the whole row block ---
        qkv = jnp.dot(x, wqkv, preferred_element_type=jnp.float32) + bqkv
        q = qkv[:, :HIDDEN]
        k = qkv[:, HIDDEN:2 * HIDDEN]
        v = qkv[:, 2 * HIDDEN:3 * HIDDEN]

        attn_parts = []
        for bi in range(bt):                                       # per-example attention
            r0 = bi * s
            qb = q[r0:r0 + s, :]
            kb = k[r0:r0 + s, :]
            vb = v[r0:r0 + s, :]
            attn_b = None
            for h in range(N_HEADS):
                lo, hi = h * HEAD_DIM, (h + 1) * HEAD_DIM
                sc = jax.lax.dot_general(qb[:, lo:hi], kb[:, lo:hi],
                                         (((1,), (1,)), ((), ())),
                                         preferred_element_type=jnp.float32)  # (s, s)
                sc = sc + bias2d[bi]
                sc = sc - jnp.max(sc, axis=-1, keepdims=True)
                p = jnp.exp(sc)
                p = p * pl.reciprocal(jnp.sum(p, axis=-1, keepdims=True), approx=True)
                ctx_h = jnp.dot(p, vb[:, lo:hi], preferred_element_type=jnp.float32)
                # Accumulate against sublane row-slice of W_o (no lane concat).
                term = jnp.dot(ctx_h, wo[lo:hi, :], preferred_element_type=jnp.float32)
                attn_b = term if attn_b is None else attn_b + term
            attn_parts.append(attn_b)
        attn_out = (jnp.concatenate(attn_parts, axis=0) if bt > 1 else attn_parts[0]) + bo

        x = _layernorm(attn_out + x, ln1g, ln1b)

        # --- feed-forward over the whole row block ---
        hmid = jnp.dot(x, w1, preferred_element_type=jnp.float32) + b1
        # TODO(synk): HF BERT/RoBERTa uses erf-based GELU; tanh approximation used here.
        hmid = jax.nn.gelu(hmid, approximate=True)
        ffn_out = jnp.dot(hmid, w2, preferred_element_type=jnp.float32) + b2
        x = _layernorm(ffn_out + x, ln2g, ln2b)

    # --- pooler (tanh dense on [CLS]) + output head, lane-dense padded logits ---
    cls = x.reshape(bt, s, HIDDEN)[:, 0, :]                        # (bt, H)
    pool_w = gmat_ref[0, :, :HIDDEN]
    head_w = gmat_ref[1, :, :]                                     # (H, OUT_PAD)
    pool_b = gvec_ref[2:3, :HIDDEN]
    head_b = gvec_ref[3:4, :]                                      # (1, OUT_PAD)
    pooled = jnp.tanh(jnp.dot(cls, pool_w, preferred_element_type=jnp.float32) + pool_b)
    logits = jnp.dot(pooled, head_w, preferred_element_type=jnp.float32) + head_b
    out_ref[...] = logits.astype(out_ref.dtype)                    # (bt, OUT_PAD) lane-dense


# ------------------------------- parameter setup --------------------------------
def _dense_params(key, din, dout):
    return {
        "w": jax.random.normal(key, (din, dout), jnp.float32) * 0.02,
        "b": jnp.zeros((1, dout), jnp.float32),
    }


def init_params(key):
    keys = jax.random.split(key, 8 + N_LAYERS)
    params = {
        "word_emb": jax.random.normal(keys[0], (VOCAB, HIDDEN), jnp.float32) * 0.02,
        "pos_emb": jax.random.normal(keys[1], (MAX_POS, HIDDEN), jnp.float32) * 0.02,
        "type_emb": jax.random.normal(keys[2], (2, HIDDEN), jnp.float32) * 0.02,
        "emb_ln_g": jnp.ones((1, HIDDEN), jnp.float32),
        "emb_ln_b": jnp.zeros((1, HIDDEN), jnp.float32),
        "pooler": _dense_params(keys[3], HIDDEN, HIDDEN),
        "head": _dense_params(keys[4], HIDDEN, N_OUT),
        "layers": [],
    }
    for li in range(N_LAYERS):
        lk = jax.random.split(keys[8 + li], 6)
        params["layers"].append({
            "q": _dense_params(lk[0], HIDDEN, HIDDEN),
            "k": _dense_params(lk[1], HIDDEN, HIDDEN),
            "v": _dense_params(lk[2], HIDDEN, HIDDEN),
            "o": _dense_params(lk[3], HIDDEN, HIDDEN),
            "ln1_g": jnp.ones((1, HIDDEN), jnp.float32),
            "ln1_b": jnp.zeros((1, HIDDEN), jnp.float32),
            "ffn1": _dense_params(lk[4], HIDDEN, INTERMEDIATE),
            "ffn2": _dense_params(lk[5], INTERMEDIATE, HIDDEN),
            "ln2_g": jnp.ones((1, HIDDEN), jnp.float32),
            "ln2_b": jnp.zeros((1, HIDDEN), jnp.float32),
        })
    return params


# ------------------------------- weight-slab packing ----------------------------
def _pack_params(params):
    """Pack all weights into 4 slabs (few large DMAs, 128-lane-aligned bands)."""
    inv_sqrt_d = 1.0 / math.sqrt(HEAD_DIM)
    layers = params["layers"]

    lmat = jnp.zeros((N_LAYERS, MAT_ROWS, MAT_COLS), jnp.float32)
    lvec = jnp.zeros((N_LAYERS, 8, VEC_COLS), jnp.float32)
    for li, l in enumerate(layers):
        wqkv = jnp.concatenate([l["q"]["w"] * inv_sqrt_d, l["k"]["w"], l["v"]["w"]], axis=1)
        bqkv = jnp.concatenate([l["q"]["b"] * inv_sqrt_d, l["k"]["b"], l["v"]["b"]], axis=1)
        lmat = lmat.at[li, :HIDDEN, QKV_OFF:QKV_OFF + 3 * HIDDEN].set(wqkv)
        lmat = lmat.at[li, :HIDDEN, WO_OFF:WO_OFF + HIDDEN].set(l["o"]["w"])
        lmat = lmat.at[li, :HIDDEN, W1_OFF:W1_OFF + INTERMEDIATE].set(l["ffn1"]["w"])
        lmat = lmat.at[li, :INTERMEDIATE, W2_OFF:W2_OFF + HIDDEN].set(l["ffn2"]["w"])
        lvec = lvec.at[li, V_BQKV, :3 * HIDDEN].set(bqkv[0])
        lvec = lvec.at[li, V_BO, :HIDDEN].set(l["o"]["b"][0])
        lvec = lvec.at[li, V_LN1G, :HIDDEN].set(l["ln1_g"][0])
        lvec = lvec.at[li, V_LN1B, :HIDDEN].set(l["ln1_b"][0])
        lvec = lvec.at[li, V_B1, :INTERMEDIATE].set(l["ffn1"]["b"][0])
        lvec = lvec.at[li, V_B2, :HIDDEN].set(l["ffn2"]["b"][0])
        lvec = lvec.at[li, V_LN2G, :HIDDEN].set(l["ln2_g"][0])
        lvec = lvec.at[li, V_LN2B, :HIDDEN].set(l["ln2_b"][0])

    gmat = jnp.zeros((2, HIDDEN, OUT_PAD), jnp.float32)
    gmat = gmat.at[0, :, :HIDDEN].set(params["pooler"]["w"])
    gmat = gmat.at[1, :, :N_OUT].set(params["head"]["w"])
    gvec = jnp.zeros((4, OUT_PAD), jnp.float32)
    gvec = gvec.at[0, :HIDDEN].set(params["emb_ln_g"][0])
    gvec = gvec.at[1, :HIDDEN].set(params["emb_ln_b"][0])
    gvec = gvec.at[2, :HIDDEN].set(params["pooler"]["b"][0])
    gvec = gvec.at[3, :N_OUT].set(params["head"]["b"][0])
    return lmat, lvec, gmat, gvec


def _pick_bt(B, S):
    """Largest divisor of B (capped) so BT*S rows approach ~128 MXU rows per step."""
    cap = max(1, min(16, 128 // max(S, 1)))
    bt = 1
    for d in range(1, B + 1):
        if B % d == 0 and d <= cap:
            bt = d
    return bt


# ---------------------------------- forward pass --------------------------------
def chemberta_forward(params, atom_ids, attn_masks):
    """Mirrors ChemBERTa.forward: BERT(input_ids, attention_mask).pooler_output -> head."""
    B, S = atom_ids.shape
    bt = _pick_bt(B, S)
    grid = B // bt

    # Embedding gathers (glue); LayerNorm happens inside the fused kernel.
    emb = (params["word_emb"][atom_ids]
           + params["pos_emb"][:S][None, :, :]
           + params["type_emb"][0][None, None, :])                    # (B, S, H)
    emb_flat = emb.reshape(B * S, HIDDEN)                             # lane-dense row block

    # Additive attention-mask bias precomputed once (0 = keep, -1e9 = pad).
    mask_bias = ((1.0 - attn_masks.astype(jnp.float32)) * (-1e9)).reshape(B, 1, S)

    lmat, lvec, gmat, gvec = _pack_params(params)

    kernel = functools.partial(_chemberta_kernel, bt=bt, s=S)

    out = pl.pallas_call(
        kernel,
        out_shape=jax.ShapeDtypeStruct((B, OUT_PAD), jnp.float32),
        grid=(grid,),
        in_specs=[
            pl.BlockSpec((bt * S, HIDDEN), lambda b: (b, 0)),          # embeddings (row block)
            pl.BlockSpec((bt, 1, S), lambda b: (b, 0, 0)),             # mask bias (per block)
            pl.BlockSpec(lmat.shape, lambda b: (0, 0, 0)),             # per-layer matrix slab
            pl.BlockSpec(lvec.shape, lambda b: (0, 0, 0)),             # per-layer vector slab
            pl.BlockSpec(gmat.shape, lambda b: (0, 0, 0)),             # pooler/head matrices
            pl.BlockSpec(gvec.shape, lambda b: (0, 0)),                # global vectors
        ],
        out_specs=pl.BlockSpec((bt, OUT_PAD), lambda b: (b, 0)),       # lane-dense logits
        compiler_params=pltpu.CompilerParams(
            dimension_semantics=("parallel",)),
    )(emb_flat, mask_bias, lmat, lvec, gmat, gvec)

    return out[:, :N_OUT]


# -------------------------------------- main ------------------------------------
if __name__ == "__main__":
    key = jax.random.PRNGKey(0)
    pkey, ikey = jax.random.split(key)
    params = init_params(pkey)

    B, S = 2, 8
    atom_ids = jax.random.randint(ikey, (B, S), 0, VOCAB, dtype=jnp.int32)
    attn_masks = jnp.ones((B, S), jnp.int32).at[1, 6:].set(0)  # second example has padding

    fwd = jax.jit(chemberta_forward)
    logits = fwd(params, atom_ids, attn_masks)
    jax.block_until_ready(logits)

    assert logits.shape == (B, N_OUT)
    assert jnp.all(jnp.isfinite(logits))
    print("KERNEL_OK")
</pallas_src>

<mosaic_0001>
module attributes {stable_mosaic.version = 11 : i64} {
  func.func @_chemberta_kernel(%arg0: i32, %arg1: memref<16x32xf32, #tpu.memory_space<vmem>>, %arg2: memref<2x1x8xf32, #tpu.memory_space<vmem>>, %arg3: memref<2x64x512xf32, #tpu.memory_space<vmem>>, %arg4: memref<2x8x128xf32, #tpu.memory_space<vmem>>, %arg5: memref<2x32x128xf32, #tpu.memory_space<vmem>>, %arg6: memref<4x128xf32, #tpu.memory_space<vmem>>, %arg7: memref<2x128xf32, #tpu.memory_space<vmem>>) attributes {dimension_semantics = [#tpu.dimension_semantics<parallel>], iteration_bounds = array<i64: 1>, scalar_prefetch = 0 : i64, scratch_operands = 0 : i64, tpu.core_type = #tpu.core_type<tc>, window_params = [{transform_indices = @transform_0, window_bounds = array<i64: 16, 32>}, {transform_indices = @transform_1, window_bounds = array<i64: 2, 1, 8>}, {pipeline_mode = #tpu.pipeline_mode<synchronous>, transform_indices = @transform_2, window_bounds = array<i64: 2, 64, 512>}, {pipeline_mode = #tpu.pipeline_mode<synchronous>, transform_indices = @transform_3, window_bounds = array<i64: 2, 8, 128>}, {pipeline_mode = #tpu.pipeline_mode<synchronous>, transform_indices = @transform_4, window_bounds = array<i64: 2, 32, 128>}, {pipeline_mode = #tpu.pipeline_mode<synchronous>, transform_indices = @transform_5, window_bounds = array<i64: 4, 128>}, {transform_indices = @transform_6, window_bounds = array<i64: 2, 128>}]} {
    %c0 = arith.constant 0 : index
    %c0_0 = arith.constant 0 : index
    %0 = vector.load %arg1[%c0, %c0_0] : memref<16x32xf32, #tpu.memory_space<vmem>>, vector<16x32xf32>
    %c0_1 = arith.constant 0 : index
    %c0_2 = arith.constant 0 : index
    %1 = vector.load %arg6[%c0_1, %c0_2] : memref<4x128xf32, #tpu.memory_space<vmem>>, vector<1x32xf32>
    %c1 = arith.constant 1 : index
    %c0_3 = arith.constant 0 : index
    %2 = vector.load %arg6[%c1, %c0_3] : memref<4x128xf32, #tpu.memory_space<vmem>>, vector<1x32xf32>
    %cst = arith.constant dense<0.000000e+00> : vector<16xf32>
    %3 = vector.multi_reduction <add>, %0, %cst [1] : vector<16x32xf32> to vector<16xf32>
    %4 = vector.shape_cast %3 : vector<16xf32> to vector<16x1xf32>
    %cst_4 = arith.constant 3.200000e+01 : f32
    %5 = vector.broadcast %cst_4 : f32 to vector<16x1xf32>
    %6 = arith.divf %4, %5 : vector<16x1xf32>
    %7 = vector.broadcast %6 : vector<16x1xf32> to vector<16x32xf32>
    %8 = arith.subf %0, %7 : vector<16x32xf32>
    %9 = arith.mulf %8, %8 : vector<16x32xf32>
    %cst_5 = arith.constant dense<0.000000e+00> : vector<16xf32>
    %10 = vector.multi_reduction <add>, %9, %cst_5 [1] : vector<16x32xf32> to vector<16xf32>
    %11 = vector.shape_cast %10 : vector<16xf32> to vector<16x1xf32>
    %cst_6 = arith.constant 3.200000e+01 : f32
    %12 = vector.broadcast %cst_6 : f32 to vector<16x1xf32>
    %13 = arith.divf %11, %12 : vector<16x1xf32>
    %cst_7 = arith.constant 9.99999996E-13 : f32
    %14 = vector.broadcast %cst_7 : f32 to vector<16x1xf32>
    %15 = arith.addf %13, %14 : vector<16x1xf32>
    %16 = math.rsqrt %15 : vector<16x1xf32>
    %17 = vector.broadcast %16 : vector<16x1xf32> to vector<16x32xf32>
    %18 = arith.mulf %8, %17 : vector<16x32xf32>
    %19 = vector.broadcast %1 : vector<1x32xf32> to vector<16x32xf32>
    %20 = arith.mulf %18, %19 : vector<16x32xf32>
    %21 = vector.broadcast %2 : vector<1x32xf32> to vector<16x32xf32>
    %22 = arith.addf %20, %21 : vector<16x32xf32>
    %c0_8 = arith.constant 0 : index
    %c0_9 = arith.constant 0 : index
    %c0_10 = arith.constant 0 : index
    %23 = vector.load %arg2[%c0_8, %c0_9, %c0_10] : memref<2x1x8xf32, #tpu.memory_space<vmem>>, vector<1x1x8xf32>
    %24 = vector.shape_cast %23 : vector<1x1x8xf32> to vector<1x8xf32>
    %25 = vector.shape_cast %24 : vector<1x8xf32> to vector<1x8xf32>
    %26 = vector.broadcast %25 : vector<1x8xf32> to vector<8x8xf32>
    %c1_11 = arith.constant 1 : index
    %c0_12 = arith.constant 0 : index
    %c0_13 = arith.constant 0 : index
    %27 = vector.load %arg2[%c1_11, %c0_12, %c0_13] : memref<2x1x8xf32, #tpu.memory_space<vmem>>, vector<1x1x8xf32>
    %28 = vector.shape_cast %27 : vector<1x1x8xf32> to vector<1x8xf32>
    %29 = vector.shape_cast %28 : vector<1x8xf32> to vector<1x8xf32>
    %30 = vector.broadcast %29 : vector<1x8xf32> to vector<8x8xf32>
    %c0_14 = arith.constant 0 : index
    %c0_15 = arith.constant 0 : index
    %c0_16 = arith.constant 0 : index
    %31 = vector.load %arg3[%c0_14, %c0_15, %c0_16] : memref<2x64x512xf32, #tpu.memory_space<vmem>>, vector<1x32x96xf32>
    %32 = vector.shape_cast %31 : vector<1x32x96xf32> to vector<32x96xf32>
    %c0_17 = arith.constant 0 : index
    %c0_18 = arith.constant 0 : index
    %c128 = arith.constant 128 : index
    %33 = vector.load %arg3[%c0_17, %c0_18, %c128] : memref<2x64x512xf32, #tpu.memory_space<vmem>>, vector<1x32x32xf32>
    %34 = vector.shape_cast %33 : vector<1x32x32xf32> to vector<32x32xf32>
    %c0_19 = arith.constant 0 : index
    %c0_20 = arith.constant 0 : index
    %c256 = arith.constant 256 : index
    %35 = vector.load %arg3[%c0_19, %c0_20, %c256] : memref<2x64x512xf32, #tpu.memory_space<vmem>>, vector<1x32x64xf32>
    %36 = vector.shape_cast %35 : vector<1x32x64xf32> to vector<32x64xf32>
    %c0_21 = arith.constant 0 : index
    %c0_22 = arith.constant 0 : index
    %c384 = arith.constant 384 : index
    %37 = vector.load %arg3[%c0_21, %c0_22, %c384] : memref<2x64x512xf32, #tpu.memory_space<vmem>>, vector<1x64x32xf32>
    %38 = vector.shape_cast %37 : vector<1x64x32xf32> to vector<64x32xf32>
    %c0_23 = arith.constant 0 : index
    %c0_24 = arith.constant 0 : index
    %c0_25 = arith.constant 0 : index
    %39 = vector.load %arg4[%c0_23, %c0_24, %c0_25] : memref<2x8x128xf32, #tpu.memory_space<vmem>>, vector<1x1x96xf32>
    %40 = vector.shape_cast %39 : vector<1x1x96xf32> to vector<1x96xf32>
    %c0_26 = arith.constant 0 : index
    %c1_27 = arith.constant 1 : index
    %c0_28 = arith.constant 0 : index
    %41 = vector.load %arg4[%c0_26, %c1_27, %c0_28] : memref<2x8x128xf32, #tpu.memory_space<vmem>>, vector<1x1x32xf32>
    %42 = vector.shape_cast %41 : vector<1x1x32xf32> to vector<1x32xf32>
    %c0_29 = arith.constant 0 : index
    %c2 = arith.constant 2 : index
    %c0_30 = arith.constant 0 : index
    %43 = vector.load %arg4[%c0_29, %c2, %c0_30] : memref<2x8x128xf32, #tpu.memory_space<vmem>>, vector<1x1x32xf32>
    %44 = vector.shape_cast %43 : vector<1x1x32xf32> to vector<1x32xf32>
    %c0_31 = arith.constant 0 : index
    %c3 = arith.constant 3 : index
    %c0_32 = arith.constant 0 : index
    %45 = vector.load %arg4[%c0_31, %c3, %c0_32] : memref<2x8x128xf32, #tpu.memory_space<vmem>>, vector<1x1x32xf32>
    %46 = vector.shape_cast %45 : vector<1x1x32xf32> to vector<1x32xf32>
    %c0_33 = arith.constant 0 : index
    %c4 = arith.constant 4 : index
    %c0_34 = arith.constant 0 : index
    %47 = vector.load %arg4[%c0_33, %c4, %c0_34] : memref<2x8x128xf32, #tpu.memory_space<vmem>>, vector<1x1x64xf32>
    %48 = vector.shape_cast %47 : vector<1x1x64xf32> to vector<1x64xf32>
    %c0_35 = arith.constant 0 : index
    %c5 = arith.constant 5 : index
    %c0_36 = arith.constant 0 : index
    %49 = vector.load %arg4[%c0_35, %c5, %c0_36] : memref<2x8x128xf32, #tpu.memory_space<vmem>>, vector<1x1x32xf32>
    %50 = vector.shape_cast %49 : vector<1x1x32xf32> to vector<1x32xf32>
    %c0_37 = arith.constant 0 : index
    %c6 = arith.constant 6 : index
    %c0_38 = arith.constant 0 : index
    %51 = vector.load %arg4[%c0_37, %c6, %c0_38] : memref<2x8x128xf32, #tpu.memory_space<vmem>>, vector<1x1x32xf32>
    %52 = vector.shape_cast %51 : vector<1x1x32xf32> to vector<1x32xf32>
    %c0_39 = arith.constant 0 : index
    %c7 = arith.constant 7 : index
    %c0_40 = arith.constant 0 : index
    %53 = vector.load %arg4[%c0_39, %c7, %c0_40] : memref<2x8x128xf32, #tpu.memory_space<vmem>>, vector<1x1x32xf32>
    %54 = vector.shape_cast %53 : vector<1x1x32xf32> to vector<1x32xf32>
    %cst_41 = arith.constant dense<0.000000e+00> : vector<16x96xf32>
    %55 = tpu.matmul %22, %32, %cst_41 {dimension_numbers = #tpu.dot_dimension_numbers<[1], [0], [0], [1], [0, 0, 1, 1], [], []>} : vector<16x32xf32>, vector<32x96xf32>, vector<16x96xf32> -> vector<16x96xf32>
    %56 = vector.broadcast %40 : vector<1x96xf32> to vector<16x96xf32>
    %57 = arith.addf %55, %56 : vector<16x96xf32>
    %58 = vector.extract_strided_slice %57 {offsets = [0, 0], sizes = [16, 32], strides = [1, 1]} : vector<16x96xf32> to vector<16x32xf32>
    %59 = vector.extract_strided_slice %57 {offsets = [0, 32], sizes = [16, 32], strides = [1, 1]} : vector<16x96xf32> to vector<16x32xf32>
    %60 = vector.extract_strided_slice %57 {offsets = [0, 64], sizes = [16, 32], strides = [1, 1]} : vector<16x96xf32> to vector<16x32xf32>
    %61 = vector.extract_strided_slice %58 {offsets = [0, 0], sizes = [8, 32], strides = [1, 1]} : vector<16x32xf32> to vector<8x32xf32>
    %62 = vector.extract_strided_slice %59 {offsets = [0, 0], sizes = [8, 32], strides = [1, 1]} : vector<16x32xf32> to vector<8x32xf32>
    %63 = vector.extract_strided_slice %60 {offsets = [0, 0], sizes = [8, 32], strides = [1, 1]} : vector<16x32xf32> to vector<8x32xf32>
    %64 = vector.extract_strided_slice %61 {offsets = [0, 0], sizes = [8, 8], strides = [1, 1]} : vector<8x32xf32> to vector<8x8xf32>
    %65 = vector.extract_strided_slice %62 {offsets = [0, 0], sizes = [8, 8], strides = [1, 1]} : vector<8x32xf32> to vector<8x8xf32>
    %cst_42 = arith.constant dense<0.000000e+00> : vector<8x8xf32>
    %66 = tpu.matmul %64, %65, %cst_42 {dimension_numbers = #tpu.dot_dimension_numbers<[1], [1], [0], [0], [0, 0, 1, 0], [], []>} : vector<8x8xf32>, vector<8x8xf32>, vector<8x8xf32> -> vector<8x8xf32>
    %67 = arith.addf %66, %26 : vector<8x8xf32>
    %cst_43 = arith.constant dense<0xFF800000> : vector<8xf32>
    %68 = vector.multi_reduction <maximumf>, %67, %cst_43 [1] : vector<8x8xf32> to vector<8xf32>
    %69 = vector.shape_cast %68 : vector<8xf32> to vector<8x1xf32>
    %70 = vector.broadcast %69 : vector<8x1xf32> to vector<8x8xf32>
    %71 = arith.subf %67, %70 : vector<8x8xf32>
    %72 = math.exp %71 : vector<8x8xf32>
    %cst_44 = arith.constant dense<0.000000e+00> : vector<8xf32>
    %73 = vector.multi_reduction <add>, %72, %cst_44 [1] : vector<8x8xf32> to vector<8xf32>
    %74 = vector.shape_cast %73 : vector<8xf32> to vector<8x1xf32>
    %75 = tpu.reciprocal %74 {approx = true} : vector<8x1xf32> -> vector<8x1xf32>
    %76 = vector.broadcast %75 : vector<8x1xf32> to vector<8x8xf32>
    %77 = arith.mulf %72, %76 : vector<8x8xf32>
    %78 = vector.extract_strided_slice %63 {offsets = [0, 0], sizes = [8, 8], strides = [1, 1]} : vector<8x32xf32> to vector<8x8xf32>
    %cst_45 = arith.constant dense<0.000000e+00> : vector<8x8xf32>
    %79 = tpu.matmul %77, %78, %cst_45 {dimension_numbers = #tpu.dot_dimension_numbers<[1], [0], [0], [1], [0, 0, 1, 1], [], []>} : vector<8x8xf32>, vector<8x8xf32>, vector<8x8xf32> -> vector<8x8xf32>
    %80 = vector.extract_strided_slice %34 {offsets = [0, 0], sizes = [8, 32], strides = [1, 1]} : vector<32x32xf32> to vector<8x32xf32>
    %cst_46 = arith.constant dense<0.000000e+00> : vector<8x32xf32>
    %81 = tpu.matmul %79, %80, %cst_46 {dimension_numbers = #tpu.dot_dimension_numbers<[1], [0], [0], [1], [0, 0, 1, 1], [], []>} : vector<8x8xf32>, vector<8x32xf32>, vector<8x32xf32> -> vector<8x32xf32>
    %82 = vector.extract_strided_slice %61 {offsets = [0, 8], sizes = [8, 8], strides = [1, 1]} : vector<8x32xf32> to vector<8x8xf32>
    %83 = vector.extract_strided_slice %62 {offsets = [0, 8], sizes = [8, 8], strides = [1, 1]} : vector<8x32xf32> to vector<8x8xf32>
    %cst_47 = arith.constant dense<0.000000e+00> : vector<8x8xf32>
    %84 = tpu.matmul %82, %83, %cst_47 {dimension_numbers = #tpu.dot_dimension_numbers<[1], [1], [0], [0], [0, 0, 1, 0], [], []>} : vector<8x8xf32>, vector<8x8xf32>, vector<8x8xf32> -> vector<8x8xf32>
    %85 = arith.addf %84, %26 : vector<8x8xf32>
    %cst_48 = arith.constant dense<0xFF800000> : vector<8xf32>
    %86 = vector.multi_reduction <maximumf>, %85, %cst_48 [1] : vector<8x8xf32> to vector<8xf32>
    %87 = vector.shape_cast %86 : vector<8xf32> to vector<8x1xf32>
    %88 = vector.broadcast %87 : vector<8x1xf32> to vector<8x8xf32>
    %89 = arith.subf %85, %88 : vector<8x8xf32>
    %90 = math.exp %89 : vector<8x8xf32>
    %cst_49 = arith.constant dense<0.000000e+00> : vector<8xf32>
    %91 = vector.multi_reduction <add>, %90, %cst_49 [1] : vector<8x8xf32> to vector<8xf32>
    %92 = vector.shape_cast %91 : vector<8xf32> to vector<8x1xf32>
    %93 = tpu.reciprocal %92 {approx = true} : vector<8x1xf32> -> vector<8x1xf32>
    %94 = vector.broadcast %93 : vector<8x1xf32> to vector<8x8xf32>
    %95 = arith.mulf %90, %94 : vector<8x8xf32>
    %96 = vector.extract_strided_slice %63 {offsets = [0, 8], sizes = [8, 8], strides = [1, 1]} : vector<8x32xf32> to vector<8x8xf32>
    %cst_50 = arith.constant dense<0.000000e+00> : vector<8x8xf32>
    %97 = tpu.matmul %95, %96, %cst_50 {dimension_numbers = #tpu.dot_dimension_numbers<[1], [0], [0], [1], [0, 0, 1, 1], [], []>} : vector<8x8xf32>, vector<8x8xf32>, vector<8x8xf32> -> vector<8x8xf32>
    %98 = vector.extract_strided_slice %34 {offsets = [8, 0], sizes = [8, 32], strides = [1, 1]} : vector<32x32xf32> to vector<8x32xf32>
    %cst_51 = arith.constant dense<0.000000e+00> : vector<8x32xf32>
    %99 = tpu.matmul %97, %98, %cst_51 {dimension_numbers = #tpu.dot_dimension_numbers<[1], [0], [0], [1], [0, 0, 1, 1], [], []>} : vector<8x8xf32>, vector<8x32xf32>, vector<8x32xf32> -> vector<8x32xf32>
    %100 = arith.addf %81, %99 : vector<8x32xf32>
    %101 = vector.extract_strided_slice %61 {offsets = [0, 16], sizes = [8, 8], strides = [1, 1]} : vector<8x32xf32> to vector<8x8xf32>
    %102 = vector.extract_strided_slice %62 {offsets = [0, 16], sizes = [8, 8], strides = [1, 1]} : vector<8x32xf32> to vector<8x8xf32>
    %cst_52 = arith.constant dense<0.000000e+00> : vector<8x8xf32>
    %103 = tpu.matmul %101, %102, %cst_52 {dimension_numbers = #tpu.dot_dimension_numbers<[1], [1], [0], [0], [0, 0, 1, 0], [], []>} : vector<8x8xf32>, vector<8x8xf32>, vector<8x8xf32> -> vector<8x8xf32>
    %104 = arith.addf %103, %26 : vector<8x8xf32>
    %cst_53 = arith.constant dense<0xFF800000> : vector<8xf32>
    %105 = vector.multi_reduction <maximumf>, %104, %cst_53 [1] : vector<8x8xf32> to vector<8xf32>
    %106 = vector.shape_cast %105 : vector<8xf32> to vector<8x1xf32>
    %107 = vector.broadcast %106 : vector<8x1xf32> to vector<8x8xf32>
    %108 = arith.subf %104, %107 : vector<8x8xf32>
    %109 = math.exp %108 : vector<8x8xf32>
    %cst_54 = arith.constant dense<0.000000e+00> : vector<8xf32>
    %110 = vector.multi_reduction <add>, %109, %cst_54 [1] : vector<8x8xf32> to vector<8xf32>
    %111 = vector.shape_cast %110 : vector<8xf32> to vector<8x1xf32>
    %112 = tpu.reciprocal %111 {approx = true} : vector<8x1xf32> -> vector<8x1xf32>
    %113 = vector.broadcast %112 : vector<8x1xf32> to vector<8x8xf32>
    %114 = arith.mulf %109, %113 : vector<8x8xf32>
    %115 = vector.extract_strided_slice %63 {offsets = [0, 16], sizes = [8, 8], strides = [1, 1]} : vector<8x32xf32> to vector<8x8xf32>
    %cst_55 = arith.constant dense<0.000000e+00> : vector<8x8xf32>
    %116 = tpu.matmul %114, %115, %cst_55 {dimension_numbers = #tpu.dot_dimension_numbers<[1], [0], [0], [1], [0, 0, 1, 1], [], []>} : vector<8x8xf32>, vector<8x8xf32>, vector<8x8xf32> -> vector<8x8xf32>
    %117 = vector.extract_strided_slice %34 {offsets = [16, 0], sizes = [8, 32], strides = [1, 1]} : vector<32x32xf32> to vector<8x32xf32>
    %cst_56 = arith.constant dense<0.000000e+00> : vector<8x32xf32>
    %118 = tpu.matmul %116, %117, %cst_56 {dimension_numbers = #tpu.dot_dimension_numbers<[1], [0], [0], [1], [0, 0, 1, 1], [], []>} : vector<8x8xf32>, vector<8x32xf32>, vector<8x32xf32> -> vector<8x32xf32>
    %119 = arith.addf %100, %118 : vector<8x32xf32>
    %120 = vector.extract_strided_slice %61 {offsets = [0, 24], sizes = [8, 8], strides = [1, 1]} : vector<8x32xf32> to vector<8x8xf32>
    %121 = vector.extract_strided_slice %62 {offsets = [0, 24], sizes = [8, 8], strides = [1, 1]} : vector<8x32xf32> to vector<8x8xf32>
    %cst_57 = arith.constant dense<0.000000e+00> : vector<8x8xf32>
    %122 = tpu.matmul %120, %121, %cst_57 {dimension_numbers = #tpu.dot_dimension_numbers<[1], [1], [0], [0], [0, 0, 1, 0], [], []>} : vector<8x8xf32>, vector<8x8xf32>, vector<8x8xf32> -> vector<8x8xf32>
    %123 = arith.addf %122, %26 : vector<8x8xf32>
    %cst_58 = arith.constant dense<0xFF800000> : vector<8xf32>
    %124 = vector.multi_reduction <maximumf>, %123, %cst_58 [1] : vector<8x8xf32> to vector<8xf32>
    %125 = vector.shape_cast %124 : vector<8xf32> to vector<8x1xf32>
    %126 = vector.broadcast %125 : vector<8x1xf32> to vector<8x8xf32>
    %127 = arith.subf %123, %126 : vector<8x8xf32>
    %128 = math.exp %127 : vector<8x8xf32>
    %cst_59 = arith.constant dense<0.000000e+00> : vector<8xf32>
    %129 = vector.multi_reduction <add>, %128, %cst_59 [1] : vector<8x8xf32> to vector<8xf32>
    %130 = vector.shape_cast %129 : vector<8xf32> to vector<8x1xf32>
    %131 = tpu.reciprocal %130 {approx = true} : vector<8x1xf32> -> vector<8x1xf32>
    %132 = vector.broadcast %131 : vector<8x1xf32> to vector<8x8xf32>
    %133 = arith.mulf %128, %132 : vector<8x8xf32>
    %134 = vector.extract_strided_slice %63 {offsets = [0, 24], sizes = [8, 8], strides = [1, 1]} : vector<8x32xf32> to vector<8x8xf32>
    %cst_60 = arith.constant dense<0.000000e+00> : vector<8x8xf32>
    %135 = tpu.matmul %133, %134, %cst_60 {dimension_numbers = #tpu.dot_dimension_numbers<[1], [0], [0], [1], [0, 0, 1, 1], [], []>} : vector<8x8xf32>, vector<8x8xf32>, vector<8x8xf32> -> vector<8x8xf32>
    %136 = vector.extract_strided_slice %34 {offsets = [24, 0], sizes = [8, 32], strides = [1, 1]} : vector<32x32xf32> to vector<8x32xf32>
    %cst_61 = arith.constant dense<0.000000e+00> : vector<8x32xf32>
    %137 = tpu.matmul %135, %136, %cst_61 {dimension_numbers = #tpu.dot_dimension_numbers<[1], [0], [0], [1], [0, 0, 1, 1], [], []>} : vector<8x8xf32>, vector<8x32xf32>, vector<8x32xf32> -> vector<8x32xf32>
    %138 = arith.addf %119, %137 : vector<8x32xf32>
    %139 = vector.extract_strided_slice %58 {offsets = [8, 0], sizes = [8, 32], strides = [1, 1]} : vector<16x32xf32> to vector<8x32xf32>
    %140 = vector.extract_strided_slice %59 {offsets = [8, 0], sizes = [8, 32], strides = [1, 1]} : vector<16x32xf32> to vector<8x32xf32>
    %141 = vector.extract_strided_slice %60 {offsets = [8, 0], sizes = [8, 32], strides = [1, 1]} : vector<16x32xf32> to vector<8x32xf32>
    %142 = vector.extract_strided_slice %139 {offsets = [0, 0], sizes = [8, 8], strides = [1, 1]} : vector<8x32xf32> to vector<8x8xf32>
    %143 = vector.extract_strided_slice %140 {offsets = [0, 0], sizes = [8, 8], strides = [1, 1]} : vector<8x32xf32> to vector<8x8xf32>
    %cst_62 = arith.constant dense<0.000000e+00> : vector<8x8xf32>
    %144 = tpu.matmul %142, %143, %cst_62 {dimension_numbers = #tpu.dot_dimension_numbers<[1], [1], [0], [0], [0, 0, 1, 0], [], []>} : vector<8x8xf32>, vector<8x8xf32>, vector<8x8xf32> -> vector<8x8xf32>
    %145 = arith.addf %144, %30 : vector<8x8xf32>
    %cst_63 = arith.constant dense<0xFF800000> : vector<8xf32>
    %146 = vector.multi_reduction <maximumf>, %145, %cst_63 [1] : vector<8x8xf32> to vector<8xf32>
    %147 = vector.shape_cast %146 : vector<8xf32> to vector<8x1xf32>
    %148 = vector.broadcast %147 : vector<8x1xf32> to vector<8x8xf32>
    %149 = arith.subf %145, %148 : vector<8x8xf32>
    %150 = math.exp %149 : vector<8x8xf32>
    %cst_64 = arith.constant dense<0.000000e+00> : vector<8xf32>
    %151 = vector.multi_reduction <add>, %150, %cst_64 [1] : vector<8x8xf32> to vector<8xf32>
    %152 = vector.shape_cast %151 : vector<8xf32> to vector<8x1xf32>
    %153 = tpu.reciprocal %152 {approx = true} : vector<8x1xf32> -> vector<8x1xf32>
    %154 = vector.broadcast %153 : vector<8x1xf32> to vector<8x8xf32>
    %155 = arith.mulf %150, %154 : vector<8x8xf32>
    %156 = vector.extract_strided_slice %141 {offsets = [0, 0], sizes = [8, 8], strides = [1, 1]} : vector<8x32xf32> to vector<8x8xf32>
    %cst_65 = arith.constant dense<0.000000e+00> : vector<8x8xf32>
    %157 = tpu.matmul %155, %156, %cst_65 {dimension_numbers = #tpu.dot_dimension_numbers<[1], [0], [0], [1], [0, 0, 1, 1], [], []>} : vector<8x8xf32>, vector<8x8xf32>, vector<8x8xf32> -> vector<8x8xf32>
    %158 = vector.extract_strided_slice %34 {offsets = [0, 0], sizes = [8, 32], strides = [1, 1]} : vector<32x32xf32> to vector<8x32xf32>
    %cst_66 = arith.constant dense<0.000000e+00> : vector<8x32xf32>
    %159 = tpu.matmul %157, %158, %cst_66 {dimension_numbers = #tpu.dot_dimension_numbers<[1], [0], [0], [1], [0, 0, 1, 1], [], []>} : vector<8x8xf32>, vector<8x32xf32>, vector<8x32xf32> -> vector<8x32xf32>
    %160 = vector.extract_strided_slice %139 {offsets = [0, 8], sizes = [8, 8], strides = [1, 1]} : vector<8x32xf32> to vector<8x8xf32>
    %161 = vector.extract_strided_slice %140 {offsets = [0, 8], sizes = [8, 8], strides = [1, 1]} : vector<8x32xf32> to vector<8x8xf32>
    %cst_67 = arith.constant dense<0.000000e+00> : vector<8x8xf32>
    %162 = tpu.matmul %160, %161, %cst_67 {dimension_numbers = #tpu.dot_dimension_numbers<[1], [1], [0], [0], [0, 0, 1, 0], [], []>} : vector<8x8xf32>, vector<8x8xf32>, vector<8x8xf32> -> vector<8x8xf32>
    %163 = arith.addf %162, %30 : vector<8x8xf32>
    %cst_68 = arith.constant dense<0xFF800000> : vector<8xf32>
    %164 = vector.multi_reduction <maximumf>, %163, %cst_68 [1] : vector<8x8xf32> to vector<8xf32>
    %165 = vector.shape_cast %164 : vector<8xf32> to vector<8x1xf32>
    %166 = vector.broadcast %165 : vector<8x1xf32> to vector<8x8xf32>
    %167 = arith.subf %163, %166 : vector<8x8xf32>
    %168 = math.exp %167 : vector<8x8xf32>
    %cst_69 = arith.constant dense<0.000000e+00> : vector<8xf32>
    %169 = vector.multi_reduction <add>, %168, %cst_69 [1] : vector<8x8xf32> to vector<8xf32>
    %170 = vector.shape_cast %169 : vector<8xf32> to vector<8x1xf32>
    %171 = tpu.reciprocal %170 {approx = true} : vector<8x1xf32> -> vector<8x1xf32>
    %172 = vector.broadcast %171 : vector<8x1xf32> to vector<8x8xf32>
    %173 = arith.mulf %168, %172 : vector<8x8xf32>
    %174 = vector.extract_strided_slice %141 {offsets = [0, 8], sizes = [8, 8], strides = [1, 1]} : vector<8x32xf32> to vector<8x8xf32>
    %cst_70 = arith.constant dense<0.000000e+00> : vector<8x8xf32>
    %175 = tpu.matmul %173, %174, %cst_70 {dimension_numbers = #tpu.dot_dimension_numbers<[1], [0], [0], [1], [0, 0, 1, 1], [], []>} : vector<8x8xf32>, vector<8x8xf32>, vector<8x8xf32> -> vector<8x8xf32>
    %176 = vector.extract_strided_slice %34 {offsets = [8, 0], sizes = [8, 32], strides = [1, 1]} : vector<32x32xf32> to vector<8x32xf32>
    %cst_71 = arith.constant dense<0.000000e+00> : vector<8x32xf32>
    %177 = tpu.matmul %175, %176, %cst_71 {dimension_numbers = #tpu.dot_dimension_numbers<[1], [0], [0], [1], [0, 0, 1, 1], [], []>} : vector<8x8xf32>, vector<8x32xf32>, vector<8x32xf32> -> vector<8x32xf32>
    %178 = arith.addf %159, %177 : vector<8x32xf32>
    %179 = vector.extract_strided_slice %139 {offsets = [0, 16], sizes = [8, 8], strides = [1, 1]} : vector<8x32xf32> to vector<8x8xf32>
    %180 = vector.extract_strided_slice %140 {offsets = [0, 16], sizes = [8, 8], strides = [1, 1]} : vector<8x32xf32> to vector<8x8xf32>
    %cst_72 = arith.constant dense<0.000000e+00> : vector<8x8xf32>
    %181 = tpu.matmul %179, %180, %cst_72 {dimension_numbers = #tpu.dot_dimension_numbers<[1], [1], [0], [0], [0, 0, 1, 0], [], []>} : vector<8x8xf32>, vector<8x8xf32>, vector<8x8xf32> -> vector<8x8xf32>
    %182 = arith.addf %181, %30 : vector<8x8xf32>
    %cst_73 = arith.constant dense<0xFF800000> : vector<8xf32>
    %183 = vector.multi_reduction <maximumf>, %182, %cst_73 [1] : vector<8x8xf32> to vector<8xf32>
    %184 = vector.shape_cast %183 : vector<8xf32> to vector<8x1xf32>
    %185 = vector.broadcast %184 : vector<8x1xf32> to vector<8x8xf32>
    %186 = arith.subf %182, %185 : vector<8x8xf32>
    %187 = math.exp %186 : vector<8x8xf32>
    %cst_74 = arith.constant dense<0.000000e+00> : vector<8xf32>
    %188 = vector.multi_reduction <add>, %187, %cst_74 [1] : vector<8x8xf32> to vector<8xf32>
    %189 = vector.shape_cast %188 : vector<8xf32> to vector<8x1xf32>
    %190 = tpu.reciprocal %189 {approx = true} : vector<8x1xf32> -> vector<8x1xf32>
    %191 = vector.broadcast %190 : vector<8x1xf32> to vector<8x8xf32>
    %192 = arith.mulf %187, %191 : vector<8x8xf32>
    %193 = vector.extract_strided_slice %141 {offsets = [0, 16], sizes = [8, 8], strides = [1, 1]} : vector<8x32xf32> to vector<8x8xf32>
    %cst_75 = arith.constant dense<0.000000e+00> : vector<8x8xf32>
    %194 = tpu.matmul %192, %193, %cst_75 {dimension_numbers = #tpu.dot_dimension_numbers<[1], [0], [0], [1], [0, 0, 1, 1], [], []>} : vector<8x8xf32>, vector<8x8xf32>, vector<8x8xf32> -> vector<8x8xf32>
    %195 = vector.extract_strided_slice %34 {offsets = [16, 0], sizes = [8, 32], strides = [1, 1]} : vector<32x32xf32> to vector<8x32xf32>
    %cst_76 = arith.constant dense<0.000000e+00> : vector<8x32xf32>
    %196 = tpu.matmul %194, %195, %cst_76 {dimension_numbers = #tpu.dot_dimension_numbers<[1], [0], [0], [1], [0, 0, 1, 1], [], []>} : vector<8x8xf32>, vector<8x32xf32>, vector<8x32xf32> -> vector<8x32xf32>
    %197 = arith.addf %178, %196 : vector<8x32xf32>
    %198 = vector.extract_strided_slice %139 {offsets = [0, 24], sizes = [8, 8], strides = [1, 1]} : vector<8x32xf32> to vector<8x8xf32>
    %199 = vector.extract_strided_slice %140 {offsets = [0, 24], sizes = [8, 8], strides = [1, 1]} : vector<8x32xf32> to vector<8x8xf32>
    %cst_77 = arith.constant dense<0.000000e+00> : vector<8x8xf32>
    %200 = tpu.matmul %198, %199, %cst_77 {dimension_numbers = #tpu.dot_dimension_numbers<[1], [1], [0], [0], [0, 0, 1, 0], [], []>} : vector<8x8xf32>, vector<8x8xf32>, vector<8x8xf32> -> vector<8x8xf32>
    %201 = arith.addf %200, %30 : vector<8x8xf32>
    %cst_78 = arith.constant dense<0xFF800000> : vector<8xf32>
    %202 = vector.multi_reduction <maximumf>, %201, %cst_78 [1] : vector<8x8xf32> to vector<8xf32>
    %203 = vector.shape_cast %202 : vector<8xf32> to vector<8x1xf32>
    %204 = vector.broadcast %203 : vector<8x1xf32> to vector<8x8xf32>
    %205 = arith.subf %201, %204 : vector<8x8xf32>
    %206 = math.exp %205 : vector<8x8xf32>
    %cst_79 = arith.constant dense<0.000000e+00> : vector<8xf32>
    %207 = vector.multi_reduction <add>, %206, %cst_79 [1] : vector<8x8xf32> to vector<8xf32>
    %208 = vector.shape_cast %207 : vector<8xf32> to vector<8x1xf32>
    %209 = tpu.reciprocal %208 {approx = true} : vector<8x1xf32> -> vector<8x1xf32>
    %210 = vector.broadcast %209 : vector<8x1xf32> to vector<8x8xf32>
    %211 = arith.mulf %206, %210 : vector<8x8xf32>
    %212 = vector.extract_strided_slice %141 {offsets = [0, 24], sizes = [8, 8], strides = [1, 1]} : vector<8x32xf32> to vector<8x8xf32>
    %cst_80 = arith.constant dense<0.000000e+00> : vector<8x8xf32>
    %213 = tpu.matmul %211, %212, %cst_80 {dimension_numbers = #tpu.dot_dimension_numbers<[1], [0], [0], [1], [0, 0, 1, 1], [], []>} : vector<8x8xf32>, vector<8x8xf32>, vector<8x8xf32> -> vector<8x8xf32>
    %214 = vector.extract_strided_slice %34 {offsets = [24, 0], sizes = [8, 32], strides = [1, 1]} : vector<32x32xf32> to vector<8x32xf32>
    %cst_81 = arith.constant dense<0.000000e+00> : vector<8x32xf32>
    %215 = tpu.matmul %213, %214, %cst_81 {dimension_numbers = #tpu.dot_dimension_numbers<[1], [0], [0], [1], [0, 0, 1, 1], [], []>} : vector<8x8xf32>, vector<8x32xf32>, vector<8x32xf32> -> vector<8x32xf32>
    %216 = arith.addf %197, %215 : vector<8x32xf32>
    %217 = tpu.concatenate %138, %216 in 0 : vector<8x32xf32>, vector<8x32xf32> -> vector<16x32xf32>
    %218 = vector.broadcast %42 : vector<1x32xf32> to vector<16x32xf32>
    %219 = arith.addf %217, %218 : vector<16x32xf32>
    %220 = arith.addf %219, %22 : vector<16x32xf32>
    %cst_82 = arith.constant dense<0.000000e+00> : vector<16xf32>
    %221 = vector.multi_reduction <add>, %220, %cst_82 [1] : vector<16x32xf32> to vector<16xf32>
    %222 = vector.shape_cast %221 : vector<16xf32> to vector<16x1xf32>
    %cst_83 = arith.constant 3.200000e+01 : f32
    %223 = vector.broadcast %cst_83 : f32 to vector<16x1xf32>
    %224 = arith.divf %222, %223 : vector<16x1xf32>
    %225 = vector.broadcast %224 : vector<16x1xf32> to vector<16x32xf32>
    %226 = arith.subf %220, %225 : vector<16x32xf32>
    %227 = arith.mulf %226, %226 : vector<16x32xf32>
    %cst_84 = arith.constant dense<0.000000e+00> : vector<16xf32>
    %228 = vector.multi_reduction <add>, %227, %cst_84 [1] : vector<16x32xf32> to vector<16xf32>
    %229 = vector.shape_cast %228 : vector<16xf32> to vector<16x1xf32>
    %cst_85 = arith.constant 3.200000e+01 : f32
    %230 = vector.broadcast %cst_85 : f32 to vector<16x1xf32>
    %231 = arith.divf %229, %230 : vector<16x1xf32>
    %cst_86 = arith.constant 9.99999996E-13 : f32
    %232 = vector.broadcast %cst_86 : f32 to vector<16x1xf32>
    %233 = arith.addf %231, %232 : vector<16x1xf32>
    %234 = math.rsqrt %233 : vector<16x1xf32>
    %235 = vector.broadcast %234 : vector<16x1xf32> to vector<16x32xf32>
    %236 = arith.mulf %226, %235 : vector<16x32xf32>
    %237 = vector.broadcast %44 : vector<1x32xf32> to vector<16x32xf32>
    %238 = arith.mulf %236, %237 : vector<16x32xf32>
    %239 = vector.broadcast %46 : vector<1x32xf32> to vector<16x32xf32>
    %240 = arith.addf %238, %239 : vector<16x32xf32>
    %cst_87 = arith.constant dense<0.000000e+00> : vector<16x64xf32>
    %241 = tpu.matmul %240, %36, %cst_87 {dimension_numbers = #tpu.dot_dimension_numbers<[1], [0], [0], [1], [0, 0, 1, 1], [], []>} : vector<16x32xf32>, vector<32x64xf32>, vector<16x64xf32> -> vector<16x64xf32>
    %242 = vector.broadcast %48 : vector<1x64xf32> to vector<16x64xf32>
    %243 = arith.addf %241, %242 : vector<16x64xf32>
    %244 = arith.mulf %243, %243 : vector<16x64xf32>
    %245 = arith.mulf %243, %244 : vector<16x64xf32>
    %cst_88 = arith.constant 4.471500e-02 : f32
    %246 = vector.broadcast %cst_88 : f32 to vector<16x64xf32>
    %247 = arith.mulf %246, %245 : vector<16x64xf32>
    %248 = arith.addf %243, %247 : vector<16x64xf32>
    %cst_89 = arith.constant 0.797884583 : f32
    %249 = vector.broadcast %cst_89 : f32 to vector<16x64xf32>
    %250 = arith.mulf %249, %248 : vector<16x64xf32>
    %251 = math.tanh %250 : vector<16x64xf32>
    %cst_90 = arith.constant 1.000000e+00 : f32
    %252 = vector.broadcast %cst_90 : f32 to vector<16x64xf32>
    %253 = arith.addf %252, %251 : vector<16x64xf32>
    %cst_91 = arith.constant 5.000000e-01 : f32
    %254 = vector.broadcast %cst_91 : f32 to vector<16x64xf32>
    %255 = arith.mulf %254, %253 : vector<16x64xf32>
    %256 = arith.mulf %243, %255 : vector<16x64xf32>
    %cst_92 = arith.constant dense<0.000000e+00> : vector<16x32xf32>
    %257 = tpu.matmul %256, %38, %cst_92 {dimension_numbers = #tpu.dot_dimension_numbers<[1], [0], [0], [1], [0, 0, 1, 1], [], []>} : vector<16x64xf32>, vector<64x32xf32>, vector<16x32xf32> -> vector<16x32xf32>
    %258 = vector.broadcast %50 : vector<1x32xf32> to vector<16x32xf32>
    %259 = arith.addf %257, %258 : vector<16x32xf32>
    %260 = arith.addf %259, %240 : vector<16x32xf32>
    %cst_93 = arith.constant dense<0.000000e+00> : vector<16xf32>
    %261 = vector.multi_reduction <add>, %260, %cst_93 [1] : vector<16x32xf32> to vector<16xf32>
    %262 = vector.shape_cast %261 : vector<16xf32> to vector<16x1xf32>
    %cst_94 = arith.constant 3.200000e+01 : f32
    %263 = vector.broadcast %cst_94 : f32 to vector<16x1xf32>
    %264 = arith.divf %262, %263 : vector<16x1xf32>
    %265 = vector.broadcast %264 : vector<16x1xf32> to vector<16x32xf32>
    %266 = arith.subf %260, %265 : vector<16x32xf32>
    %267 = arith.mulf %266, %266 : vector<16x32xf32>
    %cst_95 = arith.constant dense<0.000000e+00> : vector<16xf32>
    %268 = vector.multi_reduction <add>, %267, %cst_95 [1] : vector<16x32xf32> to vector<16xf32>
    %269 = vector.shape_cast %268 : vector<16xf32> to vector<16x1xf32>
    %cst_96 = arith.constant 3.200000e+01 : f32
    %270 = vector.broadcast %cst_96 : f32 to vector<16x1xf32>
    %271 = arith.divf %269, %270 : vector<16x1xf32>
    %cst_97 = arith.constant 9.99999996E-13 : f32
    %272 = vector.broadcast %cst_97 : f32 to vector<16x1xf32>
    %273 = arith.addf %271, %272 : vector<16x1xf32>
    %274 = math.rsqrt %273 : vector<16x1xf32>
    %275 = vector.broadcast %274 : vector<16x1xf32> to vector<16x32xf32>
    %276 = arith.mulf %266, %275 : vector<16x32xf32>
    %277 = vector.broadcast %52 : vector<1x32xf32> to vector<16x32xf32>
    %278 = arith.mulf %276, %277 : vector<16x32xf32>
    %279 = vector.broadcast %54 : vector<1x32xf32> to vector<16x32xf32>
    %280 = arith.addf %278, %279 : vector<16x32xf32>
    %c1_98 = arith.constant 1 : index
    %c0_99 = arith.constant 0 : index
    %c0_100 = arith.constant 0 : index
    %281 = vector.load %arg3[%c1_98, %c0_99, %c0_100] : memref<2x64x512xf32, #tpu.memory_space<vmem>>, vector<1x32x96xf32>
    %282 = vector.shape_cast %281 : vector<1x32x96xf32> to vector<32x96xf32>
    %c1_101 = arith.constant 1 : index
    %c0_102 = arith.constant 0 : index
    %c128_103 = arith.constant 128 : index
    %283 = vector.load %arg3[%c1_101, %c0_102, %c128_103] : memref<2x64x512xf32, #tpu.memory_space<vmem>>, vector<1x32x32xf32>
    %284 = vector.shape_cast %283 : vector<1x32x32xf32> to vector<32x32xf32>
    %c1_104 = arith.constant 1 : index
    %c0_105 = arith.constant 0 : index
    %c256_106 = arith.constant 256 : index
    %285 = vector.load %arg3[%c1_104, %c0_105, %c256_106] : memref<2x64x512xf32, #tpu.memory_space<vmem>>, vector<1x32x64xf32>
    %286 = vector.shape_cast %285 : vector<1x32x64xf32> to vector<32x64xf32>
    %c1_107 = arith.constant 1 : index
    %c0_108 = arith.constant 0 : index
    %c384_109 = arith.constant 384 : index
    %287 = vector.load %arg3[%c1_107, %c0_108, %c384_109] : memref<2x64x512xf32, #tpu.memory_space<vmem>>, vector<1x64x32xf32>
    %288 = vector.shape_cast %287 : vector<1x64x32xf32> to vector<64x32xf32>
    %c1_110 = arith.constant 1 : index
    %c0_111 = arith.constant 0 : index
    %c0_112 = arith.constant 0 : index
    %289 = vector.load %arg4[%c1_110, %c0_111, %c0_112] : memref<2x8x128xf32, #tpu.memory_space<vmem>>, vector<1x1x96xf32>
    %290 = vector.shape_cast %289 : vector<1x1x96xf32> to vector<1x96xf32>
    %c1_113 = arith.constant 1 : index
    %c1_114 = arith.constant 1 : index
    %c0_115 = arith.constant 0 : index
    %291 = vector.load %arg4[%c1_113, %c1_114, %c0_115] : memref<2x8x128xf32, #tpu.memory_space<vmem>>, vector<1x1x32xf32>
    %292 = vector.shape_cast %291 : vector<1x1x32xf32> to vector<1x32xf32>
    %c1_116 = arith.constant 1 : index
    %c2_117 = arith.constant 2 : index
    %c0_118 = arith.constant 0 : index
    %293 = vector.load %arg4[%c1_116, %c2_117, %c0_118] : memref<2x8x128xf32, #tpu.memory_space<vmem>>, vector<1x1x32xf32>
    %294 = vector.shape_cast %293 : vector<1x1x32xf32> to vector<1x32xf32>
    %c1_119 = arith.constant 1 : index
    %c3_120 = arith.constant 3 : index
    %c0_121 = arith.constant 0 : index
    %295 = vector.load %arg4[%c1_119, %c3_120, %c0_121] : memref<2x8x128xf32, #tpu.memory_space<vmem>>, vector<1x1x32xf32>
    %296 = vector.shape_cast %295 : vector<1x1x32xf32> to vector<1x32xf32>
    %c1_122 = arith.constant 1 : index
    %c4_123 = arith.constant 4 : index
    %c0_124 = arith.constant 0 : index
    %297 = vector.load %arg4[%c1_122, %c4_123, %c0_124] : memref<2x8x128xf32, #tpu.memory_space<vmem>>, vector<1x1x64xf32>
    %298 = vector.shape_cast %297 : vector<1x1x64xf32> to vector<1x64xf32>
    %c1_125 = arith.constant 1 : index
    %c5_126 = arith.constant 5 : index
    %c0_127 = arith.constant 0 : index
    %299 = vector.load %arg4[%c1_125, %c5_126, %c0_127] : memref<2x8x128xf32, #tpu.memory_space<vmem>>, vector<1x1x32xf32>
    %300 = vector.shape_cast %299 : vector<1x1x32xf32> to vector<1x32xf32>
    %c1_128 = arith.constant 1 : index
    %c6_129 = arith.constant 6 : index
    %c0_130 = arith.constant 0 : index
    %301 = vector.load %arg4[%c1_128, %c6_129, %c0_130] : memref<2x8x128xf32, #tpu.memory_space<vmem>>, vector<1x1x32xf32>
    %302 = vector.shape_cast %301 : vector<1x1x32xf32> to vector<1x32xf32>
    %c1_131 = arith.constant 1 : index
    %c7_132 = arith.constant 7 : index
    %c0_133 = arith.constant 0 : index
    %303 = vector.load %arg4[%c1_131, %c7_132, %c0_133] : memref<2x8x128xf32, #tpu.memory_space<vmem>>, vector<1x1x32xf32>
    %304 = vector.shape_cast %303 : vector<1x1x32xf32> to vector<1x32xf32>
    %cst_134 = arith.constant dense<0.000000e+00> : vector<16x96xf32>
    %305 = tpu.matmul %280, %282, %cst_134 {dimension_numbers = #tpu.dot_dimension_numbers<[1], [0], [0], [1], [0, 0, 1, 1], [], []>} : vector<16x32xf32>, vector<32x96xf32>, vector<16x96xf32> -> vector<16x96xf32>
    %306 = vector.broadcast %290 : vector<1x96xf32> to vector<16x96xf32>
    %307 = arith.addf %305, %306 : vector<16x96xf32>
    %308 = vector.extract_strided_slice %307 {offsets = [0, 0], sizes = [16, 32], strides = [1, 1]} : vector<16x96xf32> to vector<16x32xf32>
    %309 = vector.extract_strided_slice %307 {offsets = [0, 32], sizes = [16, 32], strides = [1, 1]} : vector<16x96xf32> to vector<16x32xf32>
    %310 = vector.extract_strided_slice %307 {offsets = [0, 64], sizes = [16, 32], strides = [1, 1]} : vector<16x96xf32> to vector<16x32xf32>
    %311 = vector.extract_strided_slice %308 {offsets = [0, 0], sizes = [8, 32], strides = [1, 1]} : vector<16x32xf32> to vector<8x32xf32>
    %312 = vector.extract_strided_slice %309 {offsets = [0, 0], sizes = [8, 32], strides = [1, 1]} : vector<16x32xf32> to vector<8x32xf32>
    %313 = vector.extract_strided_slice %310 {offsets = [0, 0], sizes = [8, 32], strides = [1, 1]} : vector<16x32xf32> to vector<8x32xf32>
    %314 = vector.extract_strided_slice %311 {offsets = [0, 0], sizes = [8, 8], strides = [1, 1]} : vector<8x32xf32> to vector<8x8xf32>
    %315 = vector.extract_strided_slice %312 {offsets = [0, 0], sizes = [8, 8], strides = [1, 1]} : vector<8x32xf32> to vector<8x8xf32>
    %cst_135 = arith.constant dense<0.000000e+00> : vector<8x8xf32>
    %316 = tpu.matmul %314, %315, %cst_135 {dimension_numbers = #tpu.dot_dimension_numbers<[1], [1], [0], [0], [0, 0, 1, 0], [], []>} : vector<8x8xf32>, vector<8x8xf32>, vector<8x8xf32> -> vector<8x8xf32>
    %317 = arith.addf %316, %26 : vector<8x8xf32>
    %cst_136 = arith.constant dense<0xFF800000> : vector<8xf32>
    %318 = vector.multi_reduction <maximumf>, %317, %cst_136 [1] : vector<8x8xf32> to vector<8xf32>
    %319 = vector.shape_cast %318 : vector<8xf32> to vector<8x1xf32>
    %320 = vector.broadcast %319 : vector<8x1xf32> to vector<8x8xf32>
    %321 = arith.subf %317, %320 : vector<8x8xf32>
    %322 = math.exp %321 : vector<8x8xf32>
    %cst_137 = arith.constant dense<0.000000e+00> : vector<8xf32>
    %323 = vector.multi_reduction <add>, %322, %cst_137 [1] : vector<8x8xf32> to vector<8xf32>
    %324 = vector.shape_cast %323 : vector<8xf32> to vector<8x1xf32>
    %325 = tpu.reciprocal %324 {approx = true} : vector<8x1xf32> -> vector<8x1xf32>
    %326 = vector.broadcast %325 : vector<8x1xf32> to vector<8x8xf32>
    %327 = arith.mulf %322, %326 : vector<8x8xf32>
    %328 = vector.extract_strided_slice %313 {offsets = [0, 0], sizes = [8, 8], strides = [1, 1]} : vector<8x32xf32> to vector<8x8xf32>
    %cst_138 = arith.constant dense<0.000000e+00> : vector<8x8xf32>
    %329 = tpu.matmul %327, %328, %cst_138 {dimension_numbers = #tpu.dot_dimension_numbers<[1], [0], [0], [1], [0, 0, 1, 1], [], []>} : vector<8x8xf32>, vector<8x8xf32>, vector<8x8xf32> -> vector<8x8xf32>
    %330 = vector.extract_strided_slice %284 {offsets = [0, 0], sizes = [8, 32], strides = [1, 1]} : vector<32x32xf32> to vector<8x32xf32>
    %cst_139 = arith.constant dense<0.000000e+00> : vector<8x32xf32>
    %331 = tpu.matmul %329, %330, %cst_139 {dimension_numbers = #tpu.dot_dimension_numbers<[1], [0], [0], [1], [0, 0, 1, 1], [], []>} : vector<8x8xf32>, vector<8x32xf32>, vector<8x32xf32> -> vector<8x32xf32>
    %332 = vector.extract_strided_slice %311 {offsets = [0, 8], sizes = [8, 8], strides = [1, 1]} : vector<8x32xf32> to vector<8x8xf32>
    %333 = vector.extract_strided_slice %312 {offsets = [0, 8], sizes = [8, 8], strides = [1, 1]} : vector<8x32xf32> to vector<8x8xf32>
    %cst_140 = arith.constant dense<0.000000e+00> : vector<8x8xf32>
    %334 = tpu.matmul %332, %333, %cst_140 {dimension_numbers = #tpu.dot_dimension_numbers<[1], [1], [0], [0], [0, 0, 1, 0], [], []>} : vector<8x8xf32>, vector<8x8xf32>, vector<8x8xf32> -> vector<8x8xf32>
    %335 = arith.addf %334, %26 : vector<8x8xf32>
    %cst_141 = arith.constant dense<0xFF800000> : vector<8xf32>
    %336 = vector.multi_reduction <maximumf>, %335, %cst_141 [1] : vector<8x8xf32> to vector<8xf32>
    %337 = vector.shape_cast %336 : vector<8xf32> to vector<8x1xf32>
    %338 = vector.broadcast %337 : vector<8x1xf32> to vector<8x8xf32>
    %339 = arith.subf %335, %338 : vector<8x8xf32>
    %340 = math.exp %339 : vector<8x8xf32>
    %cst_142 = arith.constant dense<0.000000e+00> : vector<8xf32>
    %341 = vector.multi_reduction <add>, %340, %cst_142 [1] : vector<8x8xf32> to vector<8xf32>
    %342 = vector.shape_cast %341 : vector<8xf32> to vector<8x1xf32>
    %343 = tpu.reciprocal %342 {approx = true} : vector<8x1xf32> -> vector<8x1xf32>
    %344 = vector.broadcast %343 : vector<8x1xf32> to vector<8x8xf32>
    %345 = arith.mulf %340, %344 : vector<8x8xf32>
    %346 = vector.extract_strided_slice %313 {offsets = [0, 8], sizes = [8, 8], strides = [1, 1]} : vector<8x32xf32> to vector<8x8xf32>
    %cst_143 = arith.constant dense<0.000000e+00> : vector<8x8xf32>
    %347 = tpu.matmul %345, %346, %cst_143 {dimension_numbers = #tpu.dot_dimension_numbers<[1], [0], [0], [1], [0, 0, 1, 1], [], []>} : vector<8x8xf32>, vector<8x8xf32>, vector<8x8xf32> -> vector<8x8xf32>
    %348 = vector.extract_strided_slice %284 {offsets = [8, 0], sizes = [8, 32], strides = [1, 1]} : vector<32x32xf32> to vector<8x32xf32>
    %cst_144 = arith.constant dense<0.000000e+00> : vector<8x32xf32>
    %349 = tpu.matmul %347, %348, %cst_144 {dimension_numbers = #tpu.dot_dimension_numbers<[1], [0], [0], [1], [0, 0, 1, 1], [], []>} : vector<8x8xf32>, vector<8x32xf32>, vector<8x32xf32> -> vector<8x32xf32>
    %350 = arith.addf %331, %349 : vector<8x32xf32>
    %351 = vector.extract_strided_slice %311 {offsets = [0, 16], sizes = [8, 8], strides = [1, 1]} : vector<8x32xf32> to vector<8x8xf32>
    %352 = vector.extract_strided_slice %312 {offsets = [0, 16], sizes = [8, 8], strides = [1, 1]} : vector<8x32xf32> to vector<8x8xf32>
    %cst_145 = arith.constant dense<0.000000e+00> : vector<8x8xf32>
    %353 = tpu.matmul %351, %352, %cst_145 {dimension_numbers = #tpu.dot_dimension_numbers<[1], [1], [0], [0], [0, 0, 1, 0], [], []>} : vector<8x8xf32>, vector<8x8xf32>, vector<8x8xf32> -> vector<8x8xf32>
    %354 = arith.addf %353, %26 : vector<8x8xf32>
    %cst_146 = arith.constant dense<0xFF800000> : vector<8xf32>
    %355 = vector.multi_reduction <maximumf>, %354, %cst_146 [1] : vector<8x8xf32> to vector<8xf32>
    %356 = vector.shape_cast %355 : vector<8xf32> to vector<8x1xf32>
    %357 = vector.broadcast %356 : vector<8x1xf32> to vector<8x8xf32>
    %358 = arith.subf %354, %357 : vector<8x8xf32>
    %359 = math.exp %358 : vector<8x8xf32>
    %cst_147 = arith.constant dense<0.000000e+00> : vector<8xf32>
    %360 = vector.multi_reduction <add>, %359, %cst_147 [1] : vector<8x8xf32> to vector<8xf32>
    %361 = vector.shape_cast %360 : vector<8xf32> to vector<8x1xf32>
    %362 = tpu.reciprocal %361 {approx = true} : vector<8x1xf32> -> vector<8x1xf32>
    %363 = vector.broadcast %362 : vector<8x1xf32> to vector<8x8xf32>
    %364 = arith.mulf %359, %363 : vector<8x8xf32>
    %365 = vector.extract_strided_slice %313 {offsets = [0, 16], sizes = [8, 8], strides = [1, 1]} : vector<8x32xf32> to vector<8x8xf32>
    %cst_148 = arith.constant dense<0.000000e+00> : vector<8x8xf32>
    %366 = tpu.matmul %364, %365, %cst_148 {dimension_numbers = #tpu.dot_dimension_numbers<[1], [0], [0], [1], [0, 0, 1, 1], [], []>} : vector<8x8xf32>, vector<8x8xf32>, vector<8x8xf32> -> vector<8x8xf32>
    %367 = vector.extract_strided_slice %284 {offsets = [16, 0], sizes = [8, 32], strides = [1, 1]} : vector<32x32xf32> to vector<8x32xf32>
    %cst_149 = arith.constant dense<0.000000e+00> : vector<8x32xf32>
    %368 = tpu.matmul %366, %367, %cst_149 {dimension_numbers = #tpu.dot_dimension_numbers<[1], [0], [0], [1], [0, 0, 1, 1], [], []>} : vector<8x8xf32>, vector<8x32xf32>, vector<8x32xf32> -> vector<8x32xf32>
    %369 = arith.addf %350, %368 : vector<8x32xf32>
    %370 = vector.extract_strided_slice %311 {offsets = [0, 24], sizes = [8, 8], strides = [1, 1]} : vector<8x32xf32> to vector<8x8xf32>
    %371 = vector.extract_strided_slice %312 {offsets = [0, 24], sizes = [8, 8], strides = [1, 1]} : vector<8x32xf32> to vector<8x8xf32>
    %cst_150 = arith.constant dense<0.000000e+00> : vector<8x8xf32>
    %372 = tpu.matmul %370, %371, %cst_150 {dimension_numbers = #tpu.dot_dimension_numbers<[1], [1], [0], [0], [0, 0, 1, 0], [], []>} : vector<8x8xf32>, vector<8x8xf32>, vector<8x8xf32> -> vector<8x8xf32>
    %373 = arith.addf %372, %26 : vector<8x8xf32>
    %cst_151 = arith.constant dense<0xFF800000> : vector<8xf32>
    %374 = vector.multi_reduction <maximumf>, %373, %cst_151 [1] : vector<8x8xf32> to vector<8xf32>
    %375 = vector.shape_cast %374 : vector<8xf32> to vector<8x1xf32>
    %376 = vector.broadcast %375 : vector<8x1xf32> to vector<8x8xf32>
    %377 = arith.subf %373, %376 : vector<8x8xf32>
    %378 = math.exp %377 : vector<8x8xf32>
    %cst_152 = arith.constant dense<0.000000e+00> : vector<8xf32>
    %379 = vector.multi_reduction <add>, %378, %cst_152 [1] : vector<8x8xf32> to vector<8xf32>
    %380 = vector.shape_cast %379 : vector<8xf32> to vector<8x1xf32>
    %381 = tpu.reciprocal %380 {approx = true} : vector<8x1xf32> -> vector<8x1xf32>
    %382 = vector.broadcast %381 : vector<8x1xf32> to vector<8x8xf32>
    %383 = arith.mulf %378, %382 : vector<8x8xf32>
    %384 = vector.extract_strided_slice %313 {offsets = [0, 24], sizes = [8, 8], strides = [1, 1]} : vector<8x32xf32> to vector<8x8xf32>
    %cst_153 = arith.constant dense<0.000000e+00> : vector<8x8xf32>
    %385 = tpu.matmul %383, %384, %cst_153 {dimension_numbers = #tpu.dot_dimension_numbers<[1], [0], [0], [1], [0, 0, 1, 1], [], []>} : vector<8x8xf32>, vector<8x8xf32>, vector<8x8xf32> -> vector<8x8xf32>
    %386 = vector.extract_strided_slice %284 {offsets = [24, 0], sizes = [8, 32], strides = [1, 1]} : vector<32x32xf32> to vector<8x32xf32>
    %cst_154 = arith.constant dense<0.000000e+00> : vector<8x32xf32>
    %387 = tpu.matmul %385, %386, %cst_154 {dimension_numbers = #tpu.dot_dimension_numbers<[1], [0], [0], [1], [0, 0, 1, 1], [], []>} : vector<8x8xf32>, vector<8x32xf32>, vector<8x32xf32> -> vector<8x32xf32>
    %388 = arith.addf %369, %387 : vector<8x32xf32>
    %389 = vector.extract_strided_slice %308 {offsets = [8, 0], sizes = [8, 32], strides = [1, 1]} : vector<16x32xf32> to vector<8x32xf32>
    %390 = vector.extract_strided_slice %309 {offsets = [8, 0], sizes = [8, 32], strides = [1, 1]} : vector<16x32xf32> to vector<8x32xf32>
    %391 = vector.extract_strided_slice %310 {offsets = [8, 0], sizes = [8, 32], strides = [1, 1]} : vector<16x32xf32> to vector<8x32xf32>
    %392 = vector.extract_strided_slice %389 {offsets = [0, 0], sizes = [8, 8], strides = [1, 1]} : vector<8x32xf32> to vector<8x8xf32>
    %393 = vector.extract_strided_slice %390 {offsets = [0, 0], sizes = [8, 8], strides = [1, 1]} : vector<8x32xf32> to vector<8x8xf32>
    %cst_155 = arith.constant dense<0.000000e+00> : vector<8x8xf32>
    %394 = tpu.matmul %392, %393, %cst_155 {dimension_numbers = #tpu.dot_dimension_numbers<[1], [1], [0], [0], [0, 0, 1, 0], [], []>} : vector<8x8xf32>, vector<8x8xf32>, vector<8x8xf32> -> vector<8x8xf32>
    %395 = arith.addf %394, %30 : vector<8x8xf32>
    %cst_156 = arith.constant dense<0xFF800000> : vector<8xf32>
    %396 = vector.multi_reduction <maximumf>, %395, %cst_156 [1] : vector<8x8xf32> to vector<8xf32>
    %397 = vector.shape_cast %396 : vector<8xf32> to vector<8x1xf32>
    %398 = vector.broadcast %397 : vector<8x1xf32> to vector<8x8xf32>
    %399 = arith.subf %395, %398 : vector<8x8xf32>
    %400 = math.exp %399 : vector<8x8xf32>
    %cst_157 = arith.constant dense<0.000000e+00> : vector<8xf32>
    %401 = vector.multi_reduction <add>, %400, %cst_157 [1] : vector<8x8xf32> to vector<8xf32>
    %402 = vector.shape_cast %401 : vector<8xf32> to vector<8x1xf32>
    %403 = tpu.reciprocal %402 {approx = true} : vector<8x1xf32> -> vector<8x1xf32>
    %404 = vector.broadcast %403 : vector<8x1xf32> to vector<8x8xf32>
    %405 = arith.mulf %400, %404 : vector<8x8xf32>
    %406 = vector.extract_strided_slice %391 {offsets = [0, 0], sizes = [8, 8], strides = [1, 1]} : vector<8x32xf32> to vector<8x8xf32>
    %cst_158 = arith.constant dense<0.000000e+00> : vector<8x8xf32>
    %407 = tpu.matmul %405, %406, %cst_158 {dimension_numbers = #tpu.dot_dimension_numbers<[1], [0], [0], [1], [0, 0, 1, 1], [], []>} : vector<8x8xf32>, vector<8x8xf32>, vector<8x8xf32> -> vector<8x8xf32>
    %408 = vector.extract_strided_slice %284 {offsets = [0, 0], sizes = [8, 32], strides = [1, 1]} : vector<32x32xf32> to vector<8x32xf32>
    %cst_159 = arith.constant dense<0.000000e+00> : vector<8x32xf32>
    %409 = tpu.matmul %407, %408, %cst_159 {dimension_numbers = #tpu.dot_dimension_numbers<[1], [0], [0], [1], [0, 0, 1, 1], [], []>} : vector<8x8xf32>, vector<8x32xf32>, vector<8x32xf32> -> vector<8x32xf32>
    %410 = vector.extract_strided_slice %389 {offsets = [0, 8], sizes = [8, 8], strides = [1, 1]} : vector<8x32xf32> to vector<8x8xf32>
    %411 = vector.extract_strided_slice %390 {offsets = [0, 8], sizes = [8, 8], strides = [1, 1]} : vector<8x32xf32> to vector<8x8xf32>
    %cst_160 = arith.constant dense<0.000000e+00> : vector<8x8xf32>
    %412 = tpu.matmul %410, %411, %cst_160 {dimension_numbers = #tpu.dot_dimension_numbers<[1], [1], [0], [0], [0, 0, 1, 0], [], []>} : vector<8x8xf32>, vector<8x8xf32>, vector<8x8xf32> -> vector<8x8xf32>
    %413 = arith.addf %412, %30 : vector<8x8xf32>
    %cst_161 = arith.constant dense<0xFF800000> : vector<8xf32>
    %414 = vector.multi_reduction <maximumf>, %413, %cst_161 [1] : vector<8x8xf32> to vector<8xf32>
    %415 = vector.shape_cast %414 : vector<8xf32> to vector<8x1xf32>
    %416 = vector.broadcast %415 : vector<8x1xf32> to vector<8x8xf32>
    %417 = arith.subf %413, %416 : vector<8x8xf32>
    %418 = math.exp %417 : vector<8x8xf32>
    %cst_162 = arith.constant dense<0.000000e+00> : vector<8xf32>
    %419 = vector.multi_reduction <add>, %418, %cst_162 [1] : vector<8x8xf32> to vector<8xf32>
    %420 = vector.shape_cast %419 : vector<8xf32> to vector<8x1xf32>
    %421 = tpu.reciprocal %420 {approx = true} : vector<8x1xf32> -> vector<8x1xf32>
    %422 = vector.broadcast %421 : vector<8x1xf32> to vector<8x8xf32>
    %423 = arith.mulf %418, %422 : vector<8x8xf32>
    %424 = vector.extract_strided_slice %391 {offsets = [0, 8], sizes = [8, 8], strides = [1, 1]} : vector<8x32xf32> to vector<8x8xf32>
    %cst_163 = arith.constant dense<0.000000e+00> : vector<8x8xf32>
    %425 = tpu.matmul %423, %424, %cst_163 {dimension_numbers = #tpu.dot_dimension_numbers<[1], [0], [0], [1], [0, 0, 1, 1], [], []>} : vector<8x8xf32>, vector<8x8xf32>, vector<8x8xf32> -> vector<8x8xf32>
    %426 = vector.extract_strided_slice %284 {offsets = [8, 0], sizes = [8, 32], strides = [1, 1]} : vector<32x32xf32> to vector<8x32xf32>
    %cst_164 = arith.constant dense<0.000000e+00> : vector<8x32xf32>
    %427 = tpu.matmul %425, %426, %cst_164 {dimension_numbers = #tpu.dot_dimension_numbers<[1], [0], [0], [1], [0, 0, 1, 1], [], []>} : vector<8x8xf32>, vector<8x32xf32>, vector<8x32xf32> -> vector<8x32xf32>
    %428 = arith.addf %409, %427 : vector<8x32xf32>
    %429 = vector.extract_strided_slice %389 {offsets = [0, 16], sizes = [8, 8], strides = [1, 1]} : vector<8x32xf32> to vector<8x8xf32>
    %430 = vector.extract_strided_slice %390 {offsets = [0, 16], sizes = [8, 8], strides = [1, 1]} : vector<8x32xf32> to vector<8x8xf32>
    %cst_165 = arith.constant dense<0.000000e+00> : vector<8x8xf32>
    %431 = tpu.matmul %429, %430, %cst_165 {dimension_numbers = #tpu.dot_dimension_numbers<[1], [1], [0], [0], [0, 0, 1, 0], [], []>} : vector<8x8xf32>, vector<8x8xf32>, vector<8x8xf32> -> vector<8x8xf32>
    %432 = arith.addf %431, %30 : vector<8x8xf32>
    %cst_166 = arith.constant dense<0xFF800000> : vector<8xf32>
    %433 = vector.multi_reduction <maximumf>, %432, %cst_166 [1] : vector<8x8xf32> to vector<8xf32>
    %434 = vector.shape_cast %433 : vector<8xf32> to vector<8x1xf32>
    %435 = vector.broadcast %434 : vector<8x1xf32> to vector<8x8xf32>
    %436 = arith.subf %432, %435 : vector<8x8xf32>
    %437 = math.exp %436 : vector<8x8xf32>
    %cst_167 = arith.constant dense<0.000000e+00> : vector<8xf32>
    %438 = vector.multi_reduction <add>, %437, %cst_167 [1] : vector<8x8xf32> to vector<8xf32>
    %439 = vector.shape_cast %438 : vector<8xf32> to vector<8x1xf32>
    %440 = tpu.reciprocal %439 {approx = true} : vector<8x1xf32> -> vector<8x1xf32>
    %441 = vector.broadcast %440 : vector<8x1xf32> to vector<8x8xf32>
    %442 = arith.mulf %437, %441 : vector<8x8xf32>
    %443 = vector.extract_strided_slice %391 {offsets = [0, 16], sizes = [8, 8], strides = [1, 1]} : vector<8x32xf32> to vector<8x8xf32>
    %cst_168 = arith.constant dense<0.000000e+00> : vector<8x8xf32>
    %444 = tpu.matmul %442, %443, %cst_168 {dimension_numbers = #tpu.dot_dimension_numbers<[1], [0], [0], [1], [0, 0, 1, 1], [], []>} : vector<8x8xf32>, vector<8x8xf32>, vector<8x8xf32> -> vector<8x8xf32>
    %445 = vector.extract_strided_slice %284 {offsets = [16, 0], sizes = [8, 32], strides = [1, 1]} : vector<32x32xf32> to vector<8x32xf32>
    %cst_169 = arith.constant dense<0.000000e+00> : vector<8x32xf32>
    %446 = tpu.matmul %444, %445, %cst_169 {dimension_numbers = #tpu.dot_dimension_numbers<[1], [0], [0], [1], [0, 0, 1, 1], [], []>} : vector<8x8xf32>, vector<8x32xf32>, vector<8x32xf32> -> vector<8x32xf32>
    %447 = arith.addf %428, %446 : vector<8x32xf32>
    %448 = vector.extract_strided_slice %389 {offsets = [0, 24], sizes = [8, 8], strides = [1, 1]} : vector<8x32xf32> to vector<8x8xf32>
    %449 = vector.extract_strided_slice %390 {offsets = [0, 24], sizes = [8, 8], strides = [1, 1]} : vector<8x32xf32> to vector<8x8xf32>
    %cst_170 = arith.constant dense<0.000000e+00> : vector<8x8xf32>
    %450 = tpu.matmul %448, %449, %cst_170 {dimension_numbers = #tpu.dot_dimension_numbers<[1], [1], [0], [0], [0, 0, 1, 0], [], []>} : vector<8x8xf32>, vector<8x8xf32>, vector<8x8xf32> -> vector<8x8xf32>
    %451 = arith.addf %450, %30 : vector<8x8xf32>
    %cst_171 = arith.constant dense<0xFF800000> : vector<8xf32>
    %452 = vector.multi_reduction <maximumf>, %451, %cst_171 [1] : vector<8x8xf32> to vector<8xf32>
    %453 = vector.shape_cast %452 : vector<8xf32> to vector<8x1xf32>
    %454 = vector.broadcast %453 : vector<8x1xf32> to vector<8x8xf32>
    %455 = arith.subf %451, %454 : vector<8x8xf32>
    %456 = math.exp %455 : vector<8x8xf32>
    %cst_172 = arith.constant dense<0.000000e+00> : vector<8xf32>
    %457 = vector.multi_reduction <add>, %456, %cst_172 [1] : vector<8x8xf32> to vector<8xf32>
    %458 = vector.shape_cast %457 : vector<8xf32> to vector<8x1xf32>
    %459 = tpu.reciprocal %458 {approx = true} : vector<8x1xf32> -> vector<8x1xf32>
    %460 = vector.broadcast %459 : vector<8x1xf32> to vector<8x8xf32>
    %461 = arith.mulf %456, %460 : vector<8x8xf32>
    %462 = vector.extract_strided_slice %391 {offsets = [0, 24], sizes = [8, 8], strides = [1, 1]} : vector<8x32xf32> to vector<8x8xf32>
    %cst_173 = arith.constant dense<0.000000e+00> : vector<8x8xf32>
    %463 = tpu.matmul %461, %462, %cst_173 {dimension_numbers = #tpu.dot_dimension_numbers<[1], [0], [0], [1], [0, 0, 1, 1], [], []>} : vector<8x8xf32>, vector<8x8xf32>, vector<8x8xf32> -> vector<8x8xf32>
    %464 = vector.extract_strided_slice %284 {offsets = [24, 0], sizes = [8, 32], strides = [1, 1]} : vector<32x32xf32> to vector<8x32xf32>
    %cst_174 = arith.constant dense<0.000000e+00> : vector<8x32xf32>
    %465 = tpu.matmul %463, %464, %cst_174 {dimension_numbers = #tpu.dot_dimension_numbers<[1], [0], [0], [1], [0, 0, 1, 1], [], []>} : vector<8x8xf32>, vector<8x32xf32>, vector<8x32xf32> -> vector<8x32xf32>
    %466 = arith.addf %447, %465 : vector<8x32xf32>
    %467 = tpu.concatenate %388, %466 in 0 : vector<8x32xf32>, vector<8x32xf32> -> vector<16x32xf32>
    %468 = vector.broadcast %292 : vector<1x32xf32> to vector<16x32xf32>
    %469 = arith.addf %467, %468 : vector<16x32xf32>
    %470 = arith.addf %469, %280 : vector<16x32xf32>
    %cst_175 = arith.constant dense<0.000000e+00> : vector<16xf32>
    %471 = vector.multi_reduction <add>, %470, %cst_175 [1] : vector<16x32xf32> to vector<16xf32>
    %472 = vector.shape_cast %471 : vector<16xf32> to vector<16x1xf32>
    %cst_176 = arith.constant 3.200000e+01 : f32
    %473 = vector.broadcast %cst_176 : f32 to vector<16x1xf32>
    %474 = arith.divf %472, %473 : vector<16x1xf32>
    %475 = vector.broadcast %474 : vector<16x1xf32> to vector<16x32xf32>
    %476 = arith.subf %470, %475 : vector<16x32xf32>
    %477 = arith.mulf %476, %476 : vector<16x32xf32>
    %cst_177 = arith.constant dense<0.000000e+00> : vector<16xf32>
    %478 = vector.multi_reduction <add>, %477, %cst_177 [1] : vector<16x32xf32> to vector<16xf32>
    %479 = vector.shape_cast %478 : vector<16xf32> to vector<16x1xf32>
    %cst_178 = arith.constant 3.200000e+01 : f32
    %480 = vector.broadcast %cst_178 : f32 to vector<16x1xf32>
    %481 = arith.divf %479, %480 : vector<16x1xf32>
    %cst_179 = arith.constant 9.99999996E-13 : f32
    %482 = vector.broadcast %cst_179 : f32 to vector<16x1xf32>
    %483 = arith.addf %481, %482 : vector<16x1xf32>
    %484 = math.rsqrt %483 : vector<16x1xf32>
    %485 = vector.broadcast %484 : vector<16x1xf32> to vector<16x32xf32>
    %486 = arith.mulf %476, %485 : vector<16x32xf32>
    %487 = vector.broadcast %294 : vector<1x32xf32> to vector<16x32xf32>
    %488 = arith.mulf %486, %487 : vector<16x32xf32>
    %489 = vector.broadcast %296 : vector<1x32xf32> to vector<16x32xf32>
    %490 = arith.addf %488, %489 : vector<16x32xf32>
    %cst_180 = arith.constant dense<0.000000e+00> : vector<16x64xf32>
    %491 = tpu.matmul %490, %286, %cst_180 {dimension_numbers = #tpu.dot_dimension_numbers<[1], [0], [0], [1], [0, 0, 1, 1], [], []>} : vector<16x32xf32>, vector<32x64xf32>, vector<16x64xf32> -> vector<16x64xf32>
    %492 = vector.broadcast %298 : vector<1x64xf32> to vector<16x64xf32>
    %493 = arith.addf %491, %492 : vector<16x64xf32>
    %494 = arith.mulf %493, %493 : vector<16x64xf32>
    %495 = arith.mulf %493, %494 : vector<16x64xf32>
    %cst_181 = arith.constant 4.471500e-02 : f32
    %496 = vector.broadcast %cst_181 : f32 to vector<16x64xf32>
    %497 = arith.mulf %496, %495 : vector<16x64xf32>
    %498 = arith.addf %493, %497 : vector<16x64xf32>
    %cst_182 = arith.constant 0.797884583 : f32
    %499 = vector.broadcast %cst_182 : f32 to vector<16x64xf32>
    %500 = arith.mulf %499, %498 : vector<16x64xf32>
    %501 = math.tanh %500 : vector<16x64xf32>
    %cst_183 = arith.constant 1.000000e+00 : f32
    %502 = vector.broadcast %cst_183 : f32 to vector<16x64xf32>
    %503 = arith.addf %502, %501 : vector<16x64xf32>
    %cst_184 = arith.constant 5.000000e-01 : f32
    %504 = vector.broadcast %cst_184 : f32 to vector<16x64xf32>
    %505 = arith.mulf %504, %503 : vector<16x64xf32>
    %506 = arith.mulf %493, %505 : vector<16x64xf32>
    %cst_185 = arith.constant dense<0.000000e+00> : vector<16x32xf32>
    %507 = tpu.matmul %506, %288, %cst_185 {dimension_numbers = #tpu.dot_dimension_numbers<[1], [0], [0], [1], [0, 0, 1, 1], [], []>} : vector<16x64xf32>, vector<64x32xf32>, vector<16x32xf32> -> vector<16x32xf32>
    %508 = vector.broadcast %300 : vector<1x32xf32> to vector<16x32xf32>
    %509 = arith.addf %507, %508 : vector<16x32xf32>
    %510 = arith.addf %509, %490 : vector<16x32xf32>
    %cst_186 = arith.constant dense<0.000000e+00> : vector<16xf32>
    %511 = vector.multi_reduction <add>, %510, %cst_186 [1] : vector<16x32xf32> to vector<16xf32>
    %512 = vector.shape_cast %511 : vector<16xf32> to vector<16x1xf32>
    %cst_187 = arith.constant 3.200000e+01 : f32
    %513 = vector.broadcast %cst_187 : f32 to vector<16x1xf32>
    %514 = arith.divf %512, %513 : vector<16x1xf32>
    %515 = vector.broadcast %514 : vector<16x1xf32> to vector<16x32xf32>
    %516 = arith.subf %510, %515 : vector<16x32xf32>
    %517 = arith.mulf %516, %516 : vector<16x32xf32>
    %cst_188 = arith.constant dense<0.000000e+00> : vector<16xf32>
    %518 = vector.multi_reduction <add>, %517, %cst_188 [1] : vector<16x32xf32> to vector<16xf32>
    %519 = vector.shape_cast %518 : vector<16xf32> to vector<16x1xf32>
    %cst_189 = arith.constant 3.200000e+01 : f32
    %520 = vector.broadcast %cst_189 : f32 to vector<16x1xf32>
    %521 = arith.divf %519, %520 : vector<16x1xf32>
    %cst_190 = arith.constant 9.99999996E-13 : f32
    %522 = vector.broadcast %cst_190 : f32 to vector<16x1xf32>
    %523 = arith.addf %521, %522 : vector<16x1xf32>
    %524 = math.rsqrt %523 : vector<16x1xf32>
    %525 = vector.broadcast %524 : vector<16x1xf32> to vector<16x32xf32>
    %526 = arith.mulf %516, %525 : vector<16x32xf32>
    %527 = vector.broadcast %302 : vector<1x32xf32> to vector<16x32xf32>
    %528 = arith.mulf %526, %527 : vector<16x32xf32>
    %529 = vector.broadcast %304 : vector<1x32xf32> to vector<16x32xf32>
    %530 = arith.addf %528, %529 : vector<16x32xf32>
    %531 = vector.shape_cast %530 : vector<16x32xf32> to vector<2x8x32xf32>
    %532 = vector.extract_strided_slice %531 {offsets = [0, 0, 0], sizes = [2, 1, 32], strides = [1, 1, 1]} : vector<2x8x32xf32> to vector<2x1x32xf32>
    %533 = vector.shape_cast %532 : vector<2x1x32xf32> to vector<2x32xf32>
    %c0_191 = arith.constant 0 : index
    %c0_192 = arith.constant 0 : index
    %c0_193 = arith.constant 0 : index
    %534 = vector.load %arg5[%c0_191, %c0_192, %c0_193] : memref<2x32x128xf32, #tpu.memory_space<vmem>>, vector<1x32x32xf32>
    %535 = vector.shape_cast %534 : vector<1x32x32xf32> to vector<32x32xf32>
    %c1_194 = arith.constant 1 : index
    %c0_195 = arith.constant 0 : index
    %c0_196 = arith.constant 0 : index
    %536 = vector.load %arg5[%c1_194, %c0_195, %c0_196] : memref<2x32x128xf32, #tpu.memory_space<vmem>>, vector<1x32x128xf32>
    %537 = vector.shape_cast %536 : vector<1x32x128xf32> to vector<32x128xf32>
    %c2_197 = arith.constant 2 : index
    %c0_198 = arith.constant 0 : index
    %538 = vector.load %arg6[%c2_197, %c0_198] : memref<4x128xf32, #tpu.memory_space<vmem>>, vector<1x32xf32>
    %c3_199 = arith.constant 3 : index
    %c0_200 = arith.constant 0 : index
    %539 = vector.load %arg6[%c3_199, %c0_200] : memref<4x128xf32, #tpu.memory_space<vmem>>, vector<1x128xf32>
    %cst_201 = arith.constant dense<0.000000e+00> : vector<2x32xf32>
    %540 = tpu.matmul %533, %535, %cst_201 {dimension_numbers = #tpu.dot_dimension_numbers<[1], [0], [0], [1], [0, 0, 1, 1], [], []>} : vector<2x32xf32>, vector<32x32xf32>, vector<2x32xf32> -> vector<2x32xf32>
    %541 = vector.broadcast %538 : vector<1x32xf32> to vector<2x32xf32>
    %542 = arith.addf %540, %541 : vector<2x32xf32>
    %543 = math.tanh %542 : vector<2x32xf32>
    %cst_202 = arith.constant dense<0.000000e+00> : vector<2x128xf32>
    %544 = tpu.matmul %543, %537, %cst_202 {dimension_numbers = #tpu.dot_dimension_numbers<[1], [0], [0], [1], [0, 0, 1, 1], [], []>} : vector<2x32xf32>, vector<32x128xf32>, vector<2x128xf32> -> vector<2x128xf32>
    %545 = vector.broadcast %539 : vector<1x128xf32> to vector<2x128xf32>
    %546 = arith.addf %544, %545 : vector<2x128xf32>
    %c0_203 = arith.constant 0 : index
    %c0_204 = arith.constant 0 : index
    %547 = vector.load %arg7[%c0_203, %c0_204] : memref<2x128xf32, #tpu.memory_space<vmem>>, vector<2x128xf32>
    tpu.vector_store %arg7[%c0_203, %c0_204], %546 {strides = array<i32>} : memref<2x128xf32, #tpu.memory_space<vmem>>, vector<2x128xf32>,
    return
  }
  func.func @transform_0(%arg0: i32) -> (i32, i32) {
    %c0_i32 = arith.constant 0 : i32
    %c0_i32_0 = arith.constant 0 : i32
    return %arg0, %c0_i32 : i32, i32
  }
  func.func @transform_1(%arg0: i32) -> (i32, i32, i32) {
    %c0_i32 = arith.constant 0 : i32
    %c0_i32_0 = arith.constant 0 : i32
    %c0_i32_1 = arith.constant 0 : i32
    return %arg0, %c0_i32, %c0_i32_0 : i32, i32, i32
  }
  func.func @transform_2(%arg0: i32) -> (i32, i32, i32) {
    %c0_i32 = arith.constant 0 : i32
    %c0_i32_0 = arith.constant 0 : i32
    %c0_i32_1 = arith.constant 0 : i32
    %c0_i32_2 = arith.constant 0 : i32
    return %c0_i32, %c0_i32_0, %c0_i32_1 : i32, i32, i32
  }
  func.func @transform_3(%arg0: i32) -> (i32, i32, i32) {
    %c0_i32 = arith.constant 0 : i32
    %c0_i32_0 = arith.constant 0 : i32
    %c0_i32_1 = arith.constant 0 : i32
    %c0_i32_2 = arith.constant 0 : i32
    return %c0_i32, %c0_i32_0, %c0_i32_1 : i32, i32, i32
  }
  func.func @transform_4(%arg0: i32) -> (i32, i32, i32) {
    %c0_i32 = arith.constant 0 : i32
    %c0_i32_0 = arith.constant 0 : i32
    %c0_i32_1 = arith.constant 0 : i32
    %c0_i32_2 = arith.constant 0 : i32
    return %c0_i32, %c0_i32_0, %c0_i32_1 : i32, i32, i32
  }
  func.func @transform_5(%arg0: i32) -> (i32, i32) {
    %c0_i32 = arith.constant 0 : i32
    %c0_i32_0 = arith.constant 0 : i32
    %c0_i32_1 = arith.constant 0 : i32
    return %c0_i32, %c0_i32_0 : i32, i32
  }
  func.func @transform_6(%arg0: i32) -> (i32, i32) {
    %c0_i32 = arith.constant 0 : i32
    %c0_i32_0 = arith.constant 0 : i32
    return %arg0, %c0_i32 : i32, i32
  }
}

</mosaic_0001>

<bundles_post_ra>
// kernel: chemberta_forward.1
= control target key start
LH: loop header
LB: loop body
LE: loop exit
PB: predicated region body
PF: predicated region fallthrough
CT: control target
= control target key end

     0   :  { %vm28_vm0 = vcmask 261120   ;;  %s2973_s0 = inlined_call_operand.vmem [shape: f32[16,32], index: 0, kind: input, shape index: {}]   ;;  %s2974_s1 = inlined_call_operand.vmem [shape: f32[2,1,8], index: 1, kind: input, shape index: {}]   ;;  %s2975_s2 = inlined_call_operand.vmem [shape: f32[2,64,512], index: 2, kind: input, shape index: {}]   ;;  %s2976_s3 = inlined_call_operand.vmem [shape: f32[2,8,128], index: 3, kind: input, shape index: {}]   ;;  %s2977_s4 = inlined_call_operand.vmem [shape: f32[2,32,128], index: 4, kind: input, shape index: {}]   ;;  %s2978_s5 = inlined_call_operand.vmem [shape: f32[4,128], index: 5, kind: input, shape index: {}]   ;;  %s2979_s6 = inlined_call_operand.hbm [shape: f32[2,128], index: 6, kind: output, shape index: {}]  }
   0x1   :  { %v24_v0 = vld [vmem:[%s2973_s0] sm:$0xff]  ;;  %v25_v1 = vld [vmem:[%s2973_s0 + $0x8] sm:$0xff] }
   0x2   :  { %v29_v2 = vsel %vm28_vm0, %v24_v0, 0.0  ;;  %v32_v3 = vsel %vm28_vm0, %v25_v1, 0.0 }
   0x3   :  { %30 = vadd.xlane.f32.xlu0 %v29_v2  ;;  %33 = vadd.xlane.f32.xlu1 %v32_v3 }
   0x4   :  { %11 = vsyncpa [#allocation3], 0  ;;  %v2347_v4 = vmov 32.0   ;;  %v98_v21 = vld [vmem:[%s2975_s2 + $0x60] sm:$0xff]  ;;  %s2348_s14 = smov 120   ;;  %s2349_s15 = smov 96  }
   0x5   :  { %2224 = vrcp.f32 %v2347_v4  ;;  %142 = vmatpush.msra.mxu0 %v98_v21  ;;  %v97_v22 = vld [vmem:[%s2975_s2 + $0x40] sm:$0xff]  ;;  %s2350_s16 = smov 64   ;;  %s2351_s17 = smov 88   ;;  %vm156_vm8 = vcmask 64512   ;;  %v2487_v21 = vld [vmem:[%s2975_s2 + $0x8] sm:$0xff]  ;;  %vm964_vm12 = vcmask 523264  }
   0x6   :  { %v96_v23 = vld [vmem:[%s2975_s2 + $0x20] sm:$0xff]  ;;  %s2352_s18 = smov 80   ;;  %s2353_s19 = smov 112   ;;  %324 = vmatpush.msra.mxu3 %v2487_v21 }
   0x7   :  { %143 = vmatpush.msra.mxu0 %v97_v22  ;;  %v95_v24 = vld [vmem:[%s2975_s2] sm:$0xff]  ;;  %s2354_s22 = smov 56   ;;  %s2355_s23 = smov 48  }
   0x8   :  { %v2202_v42 = vld [vmem:[%s2978_s5] ss:$0 sm:$0xff]  ;;  %v2203_v46 = vld [vmem:[%s2978_s5 + $0x1] ss:$0 sm:$0xff]  ;;  %s2356_s24 = smov 104   ;;  %s2357_s30 = smov 72  }
   0x9   :  { %144 = vmatpush.msra.mxu0 %v96_v23  ;;  %v2204_v53 = vld [vmem:[%s2976_s3] ss:$0 sm:$0xff]  ;;  %s2358_s7 = smov 40  }
   0xa   :  { %v2462_v60 = vld [vmem:[%s2974_s1] ss:$0 sm:$0xff] }
   0xb   :  { %v2225_v5 = vpop.eup %2224  ;;  %145 = vmatpush.msra.mxu0 %v95_v24 }
   0xc   :  { %v36_v6 = vmul.f32 32.0, %v2225_v5  ;;  %vm40_vm1 = vweird.f32 %v2225_v5 }
   0xe   :  { %v37_v7 = vsub.f32 1.0, %v36_v6 }
  0x10   :  { %v38_v8 = vmul.f32 %v2225_v5, %v37_v7 }
  0x12   :  { %v39_v9 = vadd.f32 %v2225_v5, %v38_v8 }
  0x14   :  { %v2403_v10 = vsel %vm40_vm1, %v2225_v5, %v39_v9 }
  0x76   :  { %v31_v11 = vpop.xlane.xlu0 %30  ;;  %v34_v12 = vpop.xlane.xlu1 %33 }
  0x77   :  { %v42_v13 = vmul.f32 %v2403_v10, %v31_v11  ;;  %v43_v14 = vmul.f32 %v2403_v10, %v34_v12 }
  0x79   :  { %v44_v15 = vsub.f32 %v24_v0, %v42_v13  ;;  %v45_v16 = vsub.f32 %v25_v1, %v43_v14 }
  0x7b   :  { %v46_v17 = vmul.f32 %v44_v15, %v44_v15  ;;  %v47_v18 = vmul.f32 %v45_v16, %v45_v16 }
  0x7d   :  { %v48_v19 = vsel %vm28_vm0, %v46_v17, 0.0  ;;  %v51_v20 = vsel %vm28_vm0, %v47_v18, 0.0 }
  0x7e   :  { %49 = vadd.xlane.f32.xlu0 %v48_v19  ;;  %52 = vadd.xlane.f32.xlu1 %v51_v20  ;;  %v100_v19 = vld [vmem:[%s2975_s2 + $0x28] sm:$0xff] }
  0xf1   :  { %v50_v25 = vpop.xlane.xlu0 %49  ;;  %v53_v26 = vpop.xlane.xlu1 %52 }
  0xf2   :  { %v54_v27 = vmul.f32 %v50_v25, %v2403_v10  ;;  %v55_v28 = vmul.f32 %v53_v26, %v2403_v10 }
  0xf4   :  { %v56_v29 = vadd.f32 1e-12, %v54_v27  ;;  %v57_v30 = vadd.f32 1e-12, %v55_v28  ;;  %v101_v28 = vld [vmem:[%s2975_s2 + $0x48] sm:$0xff] }
  0xf5   :  { %412 = vmatpush.msrb.mxu3 %v101_v28 }
  0xf6   :  { %2226 = vrsqrt.f32 %v56_v29  ;;  %vm74_vm2 = vweird.f32 %v57_v30  ;;  %vm64_vm5 = vweird.f32 %v56_v29 }
  0xf7   :  { %2228 = vrsqrt.f32 %v57_v30 }
  0xfc   :  { %v2227_v31 = vpop.eup %2226 }
  0xfd   :  { %v2229_v32 = vpop.eup %2228  ;;  %v59_v33 = vmul.f32 %v2227_v31, %v56_v29  ;;  %vm65_vm4 = vweird.f32 %v2227_v31 }
  0xfe   :  { %v69_v34 = vmul.f32 %v2229_v32, %v57_v30  ;;  %vm75_vm3 = vweird.f32 %v2229_v32  ;;  %vm66_vm7 = vmor %vm64_vm5, %vm65_vm4 }
  0xff   :  { %v60_v35 = vmul.f32 %v2227_v31, %v59_v33  ;;  %vm76_vm6 = vmor %vm74_vm2, %vm75_vm3 }
 0x100   :  { %v70_v36 = vmul.f32 %v2229_v32, %v69_v34 }
 0x101   :  { %v61_v37 = vmul.f32 0.5, %v60_v35 }
 0x102   :  { %v71_v38 = vmul.f32 0.5, %v70_v36 }
 0x103   :  { %v62_v39 = vsub.f32 1.5, %v61_v37 }
 0x104   :  { %v72_v40 = vsub.f32 1.5, %v71_v38 }
 0x105   :  { %v63_v41 = vmul.f32 %v2227_v31, %v62_v39 }
 0x106   :  { %v73_v43 = vmul.f32 %v2229_v32, %v72_v40 }
 0x107   :  { %v67_v44 = vsel %vm66_vm7, %v2227_v31, %v63_v41 }
 0x108   :  { %v78_v45 = vmul.f32 %v67_v44, %v44_v15  ;;  %v77_v47 = vsel %vm76_vm6, %v2229_v32, %v73_v43 }
 0x109   :  { %v79_v49 = vmul.f32 %v77_v47, %v45_v16 }
 0x10a   :  { %v81_v48 = vmul.f32 %v2202_v42, %v78_v45 }
 0x10b   :  { %v82_v51 = vmul.f32 %v2202_v42, %v79_v49 }
 0x10c   :  { %v2429_v50 = vadd.f32 %v2203_v46, %v81_v48 }
 0x10d   :  { %v2433_v52 = vadd.f32 %v2203_v46, %v82_v51 }
 0x10e   :  { %2079 = vmatmul.msk.f32.vlgmr.msra.gmra.mxu0 %vm28_vm0, %v2429_v50 }
 0x116   :  { %2080 = vmatmul.msk.f32.gmra.mxu0 %vm28_vm0, %v2433_v52 }
 0x18b   :  { %v147_v54 = vpop.f32.mrf.mxu0 }
 0x18c   :  { %v2440_v55 = vadd.f32 %v2204_v53, %v147_v54 }
 0x18e   :  { %218 = vrot.lane.b32.xlu0 %v2440_v55, %s2348_s14  ;;  %154 = vrot.lane.b32.xlu2 %v2440_v55, %s2349_s15 }
 0x193   :  { %v150_v0 = vpop.f32.mrf.mxu0 }
 0x194   :  { %v2476_v15 = vadd.f32 %v2204_v53, %v150_v0 }
 0x196   :  { %192 = vrot.lane.b32.xlu0 %v2440_v55, %s2350_s16  ;;  %220 = vrot.lane.b32.xlu2 %v2440_v55, %s2351_s17 }
 0x19e   :  { %331 = vrot.lane.b32.xlu0 %v2440_v55, %s2352_s18 }
 0x1a6   :  { %329 = vrot.lane.b32.xlu0 %v2440_v55, %s2353_s19 }
 0x1e8   :  { %v155_v56 = vpop.permute.xlu2 %154 }
 0x1e9   :  { %2081 = vmatpush.xpose.msk.msra.mxu1 %vm156_vm8, %v155_v56 }
 0x1ec   :  { %2082 = vmatmul.msk.f32.vlgmr.msra.gmra.mxu1 %vm156_vm8, %v2440_v55 }
 0x1ed   :  { %301 = vmatpush.msrb.mxu1 %v100_v19 }
 0x1f0   :  { %v221_v57 = vpop.permute.xlu2 %220 }
 0x1f1   :  { %2084 = vmatpush.xpose.msk.msrb.mxu0 %vm156_vm8, %v221_v57 }
 0x200   :  { %v219_v58 = vpop.permute.xlu0 %218 }
 0x201   :  { %2085 = vmatmul.msk.f32.vlgmr.msrb.gmra.mxu0 %vm156_vm8, %v219_v58 }
 0x208   :  { %v193_v59 = vpop.permute.xlu0 %192 }
 0x209   :  { %213 = vmatpush.msra.mxu2 %v193_v59 }
 0x210   :  { %v332_v23 = vpop.permute.xlu0 %331 }
 0x218   :  { %v330_v27 = vpop.permute.xlu0 %329 }
 0x269   :  { %v178_v61 = vpop.f32.mrf.mxu1 }
 0x26a   :  { %v179_v62 = vadd.f32 %v2462_v60, %v178_v61 }
 0x26c   :  { %v181_v63 = vsel %vm156_vm8, %v179_v62, -inf }
 0x26d   :  { %182 = vmax.xlane.f32.xlu1 %v181_v63 }
 0x27e   :  { %v243_v1 = vpop.f32.mrf.mxu0 }
 0x27f   :  { %v244_v2 = vadd.f32 %v2462_v60, %v243_v1  ;;  %v2529_v1 = vld [vmem:[%s2974_s1 + $0x1] ss:$0 sm:$0xff] }
 0x281   :  { %v246_v3 = vsel %vm156_vm8, %v244_v2, -inf }
 0x282   :  { %247 = vmax.xlane.f32.xlu2 %v246_v3 }
 0x2e0   :  { %v183_v4 = vpop.xlane.xlu1 %182 }
 0x2e1   :  { %v184_v5 = vsub.f32 %v179_v62, %v183_v4 }
 0x2e3   :  { %v185_v6 = vmul.f32 1.442695, %v184_v5 }
 0x2e5   :  { %2230 = vpow2.f32 %v185_v6 }
 0x2eb   :  { %v2231_v7 = vpop.eup %2230 }
 0x2ec   :  { %v187_v8 = vsel %vm156_vm8, %v2231_v7, 0.0 }
 0x2ed   :  { %188 = vadd.xlane.f32.xlu1 %v187_v8 }
 0x2f5   :  { %v248_v9 = vpop.xlane.xlu2 %247 }
 0x2f6   :  { %v249_v11 = vsub.f32 %v244_v2, %v248_v9 }
 0x2f8   :  { %v250_v12 = vmul.f32 1.442695, %v249_v11 }
 0x2fa   :  { %2232 = vpow2.f32 %v250_v12 }
 0x300   :  { %v2233_v13 = vpop.eup %2232 }
 0x301   :  { %v252_v14 = vsel %vm156_vm8, %v2233_v13, 0.0 }
 0x302   :  { %253 = vadd.xlane.f32.xlu1 %v252_v14 }
 0x31b   :  { %257 = vrot.lane.b32.xlu1 %v2440_v55, %s2354_s22 }
 0x323   :  { %368 = vrot.lane.b32.xlu1 %v2440_v55, %s2355_s23 }
 0x32b   :  { %418 = vrot.lane.b32.xlu1 %v2440_v55, %s2356_s24 }
 0x333   :  { %508 = vrot.lane.b32.xlu1 %v2476_v15, %s2349_s15 }
 0x360   :  { %v189_v16 = vpop.xlane.xlu1 %188 }
 0x361   :  { %2234 = vrcp.f32 %v189_v16 }
 0x367   :  { %v2235_v17 = vpop.eup %2234 }
 0x368   :  { %v191_v18 = vmul.f32 %v2235_v17, %v2231_v7  ;;  %v2545_v7 = vld [vmem:[%s2975_s2 + $0x68] sm:$0xff] }
 0x36a   :  { %2083 = vmatmul.msk.f32.vlgmr.msra.gmra.mxu2 %vm156_vm8, %v191_v18 }
 0x375   :  { %v254_v20 = vpop.xlane.xlu1 %253 }
 0x376   :  { %2236 = vrcp.f32 %v254_v20 }
 0x37c   :  { %v2237_v22 = vpop.eup %2236 }
 0x37d   :  { %v256_v25 = vmul.f32 %v2237_v22, %v2233_v13 }
 0x38d   :  { %v258_v24 = vpop.permute.xlu1 %257 }
 0x38e   :  { %278 = vmatpush.msrb.mxu2 %v258_v24 }
 0x38f   :  { %2086 = vmatmul.msk.f32.vlgmr.msrb.gmra.mxu2 %vm156_vm8, %v256_v25 }
 0x390   :  { %2089 = vmatpush.xpose.msk.msra.mxu2 %vm156_vm8, %v332_v23 }
 0x395   :  { %v369_v26 = vpop.permute.xlu1 %368 }
 0x396   :  { %389 = vmatpush.msra.mxu1 %v369_v26 }
 0x397   :  { %2090 = vmatmul.msk.f32.vlgmr.msra.gmra.mxu2 %vm156_vm8, %v330_v27 }
 0x39d   :  { %v419_v29 = vpop.permute.xlu1 %418 }
 0x3a5   :  { %v509_v31 = vpop.permute.xlu1 %508 }
 0x3ed   :  { %v215_v30 = vpop.f32.mrf.mxu2 }
 0x3ee   :  { %2088 = vmatmul.msk.f32.vlgmr.msra.gmra.mxu3 %vm156_vm8, %v215_v30 }
 0x3ef   :  { %2097 = vmatpush.xpose.msk.msra.mxu3 %vm156_vm8, %v509_v31 }
 0x412   :  { %v280_v32 = vpop.f32.mrf.mxu2 }
 0x413   :  { %2087 = vmatmul.msk.f32.vlgmr.msrb.gmra.mxu1 %vm156_vm8, %v280_v32 }
 0x414   :  { %501 = vmatpush.msrb.mxu1 %v2545_v7 }
 0x41a   :  { %v354_v33 = vpop.f32.mrf.mxu2 }
 0x41b   :  { %v355_v34 = vadd.f32 %v2462_v60, %v354_v33 }
 0x41d   :  { %v357_v35 = vsel %vm156_vm8, %v355_v34, -inf }
 0x41e   :  { %358 = vmax.xlane.f32.xlu2 %v357_v35 }
 0x436   :  { %420 = vrot.lane.b32.xlu2 %v2440_v55, %s2357_s30 }
 0x471   :  { %v326_v61 = vpop.f32.mrf.mxu3 }
 0x490   :  { %v2515_v48 = vpop.f32.mrf.mxu1 }
 0x491   :  { %v359_v36 = vpop.xlane.xlu2 %358  ;;  %v327_v24 = vadd.f32 %v326_v61, %v2515_v48 }
 0x492   :  { %v360_v37 = vsub.f32 %v355_v34, %v359_v36 }
 0x494   :  { %v361_v38 = vmul.f32 1.442695, %v360_v37 }
 0x496   :  { %2238 = vpow2.f32 %v361_v38 }
 0x499   :  { %v421_v39 = vpop.permute.xlu2 %420 }
 0x49a   :  { %2093 = vmatpush.xpose.msk.msra.mxu0 %vm156_vm8, %v421_v39 }
 0x49c   :  { %v2239_v40 = vpop.eup %2238 }
 0x49d   :  { %2094 = vmatmul.msk.f32.vlgmr.msra.gmra.mxu0 %vm156_vm8, %v419_v29  ;;  %v363_v41 = vsel %vm156_vm8, %v2239_v40, 0.0  ;;  %v2560_v29 = vld [vmem:[%s2976_s3 + $0x1] ss:$0 sm:$0xff] }
 0x49e   :  { %364 = vadd.xlane.f32.xlu0 %v363_v41 }
 0x511   :  { %v365_v42 = vpop.xlane.xlu0 %364 }
 0x512   :  { %2240 = vrcp.f32 %v365_v42 }
 0x518   :  { %v2241_v43 = vpop.eup %2240 }
 0x519   :  { %v367_v44 = vmul.f32 %v2241_v43, %v2239_v40 }
 0x51a   :  { %v443_v45 = vpop.f32.mrf.mxu0 }
 0x51b   :  { %v444_v46 = vadd.f32 %v2462_v60, %v443_v45  ;;  %2091 = vmatmul.msk.f32.vlgmr.msra.gmra.mxu1 %vm156_vm8, %v367_v44 }
 0x51d   :  { %v446_v47 = vsel %vm156_vm8, %v444_v46, -inf }
 0x51e   :  { %447 = vmax.xlane.f32.xlu1 %v446_v47 }
 0x537   :  { %684 = vrot.lane.b32.xlu1 %v2476_v15, %s2352_s18 }
 0x53f   :  { %545 = vrot.lane.b32.xlu1 %v2476_v15, %s2350_s16 }
 0x547   :  { %771 = vrot.lane.b32.xlu1 %v2476_v15, %s2356_s24 }
 0x591   :  { %v448_v49 = vpop.xlane.xlu1 %447 }
 0x592   :  { %v449_v51 = vsub.f32 %v444_v46, %v448_v49 }
 0x594   :  { %v450_v53 = vmul.f32 1.442695, %v449_v51 }
 0x596   :  { %2242 = vpow2.f32 %v450_v53 }
 0x598   :  { %v391_v54 = vpop.f32.mrf.mxu1 }
 0x599   :  { %2092 = vmatmul.msk.f32.vlgmr.msrb.gmra.mxu3 %vm156_vm8, %v391_v54 }
 0x59a   :  { %654 = vmatpush.msrb.mxu3 %v100_v19 }
 0x59c   :  { %v2243_v56 = vpop.eup %2242 }
 0x59d   :  { %v452_v57 = vsel %vm156_vm8, %v2243_v56, 0.0 }
 0x59e   :  { %453 = vadd.xlane.f32.xlu0 %v452_v57 }
 0x5a1   :  { %2098 = vmatmul.msk.f32.vlgmr.msra.gmra.mxu3 %vm156_vm8, %v2476_v15 }
 0x5a2   :  { %765 = vmatpush.msra.mxu3 %v101_v28 }
 0x5a9   :  { %v685_v58 = vpop.permute.xlu1 %684 }
 0x5b1   :  { %v546_v59 = vpop.permute.xlu1 %545 }
 0x5b2   :  { %457 = vrot.lane.b32.xlu0 %v2440_v55, %s2358_s7  ;;  %566 = vmatpush.msrb.mxu0 %v546_v59 }
 0x5b4   :  { %677 = vmatpush.msra.mxu0 %v2487_v21 }
 0x5b9   :  { %v772_v36 = vpop.permute.xlu1 %771 }
 0x5ba   :  { %573 = vrot.lane.b32.xlu0 %v2476_v15, %s2351_s17 }
 0x611   :  { %v454_v62 = vpop.xlane.xlu0 %453 }
 0x612   :  { %2244 = vrcp.f32 %v454_v62 }
 0x618   :  { %v2245_v0 = vpop.eup %2244 }
 0x619   :  { %v456_v2 = vmul.f32 %v2245_v0, %v2243_v56 }
 0x61c   :  { %v414_v63 = vpop.f32.mrf.mxu3 }
 0x61d   :  { %v417_v27 = vadd.f32 %v414_v63, %v327_v24 }
 0x624   :  { %v531_v3 = vpop.f32.mrf.mxu3  ;;  %v458_v4 = vpop.permute.xlu0 %457 }
 0x625   :  { %v532_v55 = vadd.f32 %v2529_v1, %v531_v3  ;;  %478 = vmatpush.msrb.mxu2 %v458_v4 }
 0x626   :  { %2095 = vmatmul.msk.f32.vlgmr.msrb.gmra.mxu2 %vm156_vm8, %v456_v2 }
 0x627   :  { %v534_v5 = vsel %vm156_vm8, %v532_v55, -inf }
 0x628   :  { %535 = vmax.xlane.f32.xlu2 %v534_v5 }
 0x62c   :  { %v574_v6 = vpop.permute.xlu0 %573 }
 0x62d   :  { %2100 = vmatpush.xpose.msk.msra.mxu2 %vm156_vm8, %v574_v6 }
 0x631   :  { %2105 = vmatpush.xpose.msk.msrb.mxu2 %vm156_vm8, %v685_v58 }
 0x640   :  { %571 = vrot.lane.b32.xlu2 %v2476_v15, %s2348_s14 }
 0x648   :  { %682 = vrot.lane.b32.xlu2 %v2476_v15, %s2353_s19 }
 0x650   :  { %773 = vrot.lane.b32.xlu2 %v2476_v15, %s2357_s30 }
 0x69b   :  { %v536_v8 = vpop.xlane.xlu2 %535 }
 0x69c   :  { %v537_v9 = vsub.f32 %v532_v55, %v536_v8 }
 0x69e   :  { %v538_v11 = vmul.f32 1.442695, %v537_v9 }
 0x6a0   :  { %2246 = vpow2.f32 %v538_v11 }
 0x6a3   :  { %v572_v12 = vpop.permute.xlu2 %571 }
 0x6a4   :  { %2101 = vmatmul.msk.f32.vlgmr.msra.gmra.mxu2 %vm156_vm8, %v572_v12 }
 0x6a6   :  { %v2247_v13 = vpop.eup %2246 }
 0x6a7   :  { %v540_v14 = vsel %vm156_vm8, %v2247_v13, 0.0 }
 0x6a8   :  { %541 = vadd.xlane.f32.xlu0 %v540_v14 }
 0x6a9   :  { %v480_v16 = vpop.f32.mrf.mxu2 }
 0x6aa   :  { %2096 = vmatmul.msk.f32.vlgmr.msrb.gmra.mxu1 %vm156_vm8, %v480_v16 }
 0x6ab   :  { %v683_v17 = vpop.permute.xlu2 %682 }
 0x6ac   :  { %2106 = vmatmul.msk.f32.vlgmr.msrb.gmra.mxu2 %vm156_vm8, %v683_v17 }
 0x6b3   :  { %v774_v21 = vpop.permute.xlu2 %773 }
 0x71b   :  { %v542_v18 = vpop.xlane.xlu0 %541 }
 0x71c   :  { %2248 = vrcp.f32 %v542_v18 }
 0x722   :  { %v2249_v19 = vpop.eup %2248 }
 0x723   :  { %v544_v20 = vmul.f32 %v2249_v19, %v2247_v13  ;;  %v106_v19 = vld [vmem:[%s2975_s2 + $0x70] sm:$0xff] }
 0x725   :  { %2099 = vmatmul.msk.f32.vlgmr.msrb.gmra.mxu0 %vm156_vm8, %v544_v20 }
 0x726   :  { %2109 = vmatpush.xpose.msk.msrb.mxu0 %vm156_vm8, %v774_v21 }
 0x727   :  { %v596_v22 = vpop.f32.mrf.mxu2  ;;  %v503_v26 = vpop.f32.mrf.mxu1 }
 0x728   :  { %v597_v23 = vadd.f32 %v2529_v1, %v596_v22  ;;  %v506_v28 = vadd.f32 %v503_v26, %v417_v27  ;;  %v105_v22 = vld [vmem:[%s2975_s2 + $0x50] sm:$0xff]  ;;  %v2604_v26 = vld [vmem:[%s2976_s3 + $0x2] ss:$0 sm:$0xff] }
 0x72a   :  { %v599_v25 = vsel %vm156_vm8, %v597_v23, -inf  ;;  %v861_v32 = vadd.f32 %v2560_v29, %v506_v28 }
 0x72b   :  { %600 = vmax.xlane.f32.xlu2 %v599_v25  ;;  %v103_v25 = vld [vmem:[%s2975_s2 + $0x10] sm:$0xff] }
 0x72c   :  { %v863_v34 = vadd.f32 %v861_v32, %v2429_v50 }
 0x72e   :  { %v865_v35 = vsel %vm28_vm0, %v863_v34, 0.0 }
 0x72f   :  { %v707_v30 = vpop.f32.mrf.mxu2 }
 0x730   :  { %v708_v31 = vadd.f32 %v2529_v1, %v707_v30 }
 0x732   :  { %v710_v33 = vsel %vm156_vm8, %v708_v31, -inf }
 0x733   :  { %711 = vmax.xlane.f32.xlu1 %v710_v33 }
 0x73b   :  { %866 = vadd.xlane.f32.xlu1 %v865_v35 }
 0x743   :  { %721 = vrot.lane.b32.xlu2 %v2476_v15, %s2355_s23 }
 0x74b   :  { %810 = vrot.lane.b32.xlu2 %v2476_v15, %s2358_s7 }
 0x79e   :  { %v601_v37 = vpop.xlane.xlu2 %600 }
 0x79f   :  { %v602_v38 = vsub.f32 %v597_v23, %v601_v37  ;;  %v104_v23 = vld [vmem:[%s2975_s2 + $0x30] sm:$0xff]  ;;  %v113_v37 = vld [vmem:[%s2975_s2 + $0xd8] sm:$0xff] }
 0x7a1   :  { %v603_v39 = vmul.f32 1.442695, %v602_v38  ;;  %v112_v38 = vld [vmem:[%s2975_s2 + $0xb8] sm:$0xff] }
 0x7a2   :  { %v568_v40 = vpop.f32.mrf.mxu0 }
 0x7a3   :  { %2250 = vpow2.f32 %v603_v39  ;;  %2104 = vmatmul.msk.f32.vlgmr.msra.gmra.mxu0 %vm156_vm8, %v568_v40  ;;  %v111_v40 = vld [vmem:[%s2975_s2 + $0x98] sm:$0xff] }
 0x7a6   :  { %v722_v41 = vpop.permute.xlu2 %721  ;;  %v712_v42 = vpop.xlane.xlu1 %711 }
 0x7a7   :  { %v713_v50 = vsub.f32 %v708_v31, %v712_v42  ;;  %v2611_v31 = vld [vmem:[%s2976_s3 + $0x3] ss:$0 sm:$0xff]  ;;  %v109_v42 = vld [vmem:[%s2975_s2 + $0x58] sm:$0xff] }
 0x7a9   :  { %v2251_v43 = vpop.eup %2250  ;;  %v714_v44 = vmul.f32 1.442695, %v713_v50 }
 0x7aa   :  { %v605_v45 = vsel %vm156_vm8, %v2251_v43, 0.0 }
 0x7ab   :  { %2252 = vpow2.f32 %v714_v44  ;;  %606 = vadd.xlane.f32.xlu0 %v605_v45  ;;  %2110 = vmatmul.msk.f32.vlgmr.msrb.gmra.mxu0 %vm156_vm8, %v772_v36  ;;  %v114_v36 = vld [vmem:[%s2975_s2 + $0xf8] sm:$0xff] }
 0x7ac   :  { %979 = vmatpush.msra.mxu0 %v114_v36  ;;  %v107_v45 = vld [vmem:[%s2975_s2 + $0x18] sm:$0xff] }
 0x7ae   :  { %v811_v46 = vpop.permute.xlu2 %810  ;;  %v867_v47 = vpop.xlane.xlu1 %866  ;;  %980 = vmatpush.msra.mxu0 %v113_v37 }
 0x7af   :  { %v871_v48 = vmul.f32 %v867_v47, %v2403_v10  ;;  %831 = vmatpush.msra.mxu2 %v811_v46  ;;  %v2644_v47 = vld [vmem:[%s2976_s3 + $0x4] ss:$0 sm:$0xff] }
 0x7b0   :  { %981 = vmatpush.msra.mxu0 %v112_v38 }
 0x7b1   :  { %v2253_v49 = vpop.eup %2252  ;;  %v873_v51 = vsub.f32 %v863_v34, %v871_v48 }
 0x7b2   :  { %v716_v53 = vsel %vm156_vm8, %v2253_v49, 0.0  ;;  %982 = vmatpush.msra.mxu0 %v111_v40 }
 0x7b3   :  { %717 = vadd.xlane.f32.xlu0 %v716_v53  ;;  %v875_v54 = vmul.f32 %v873_v51, %v873_v51 }
 0x7b5   :  { %v877_v56 = vsel %vm28_vm0, %v875_v54, 0.0 }
 0x7b6   :  { %878 = vadd.xlane.f32.xlu1 %v877_v56 }
 0x7c7   :  { %610 = vrot.lane.b32.xlu0 %v2476_v15, %s2354_s22 }
 0x81e   :  { %v607_v58 = vpop.xlane.xlu0 %606 }
 0x81f   :  { %2254 = vrcp.f32 %v607_v58 }
 0x820   :  { %v2579_v57 = vpop.f32.mrf.mxu0 }
 0x825   :  { %v2255_v0 = vpop.eup %2254 }
 0x826   :  { %v718_v63 = vpop.xlane.xlu0 %717  ;;  %v609_v2 = vmul.f32 %v2255_v0, %v2251_v43  ;;  %v108_v43 = vld [vmem:[%s2975_s2 + $0x38] sm:$0xff]  ;;  %v2652_v0 = vld [vmem:[%s2976_s3 + $0x5] ss:$0 sm:$0xff] }
 0x827   :  { %2256 = vrcp.f32 %v718_v63 }
 0x828   :  { %v796_v59 = vpop.f32.mrf.mxu0 }
 0x829   :  { %v797_v61 = vadd.f32 %v2529_v1, %v796_v59  ;;  %v879_v55 = vpop.xlane.xlu1 %878 }
 0x82a   :  { %v883_v5 = vmul.f32 %v879_v55, %v2403_v10 }
 0x82b   :  { %v799_v62 = vsel %vm156_vm8, %v797_v61, -inf }
 0x82c   :  { %800 = vmax.xlane.f32.xlu0 %v799_v62  ;;  %v885_v6 = vadd.f32 1e-12, %v883_v5 }
 0x82d   :  { %v2257_v15 = vpop.eup %2256 }
 0x82e   :  { %v720_v4 = vmul.f32 %v2257_v15, %v2253_v49  ;;  %2258 = vrsqrt.f32 %v885_v6  ;;  %vm893_vm10 = vweird.f32 %v885_v6 }
 0x834   :  { %v2259_v12 = vpop.eup %2258 }
 0x835   :  { %v888_v13 = vmul.f32 %v2259_v12, %v885_v6  ;;  %vm894_vm9 = vweird.f32 %v2259_v12 }
 0x836   :  { %vm895_vm11 = vmor %vm893_vm10, %vm894_vm9 }
 0x837   :  { %v889_v17 = vmul.f32 %v2259_v12, %v888_v13 }
 0x839   :  { %v611_v3 = vpop.permute.xlu0 %610 }
 0x83a   :  { %631 = vmatpush.msra.mxu1 %v611_v3 }
 0x83b   :  { %2102 = vmatmul.msk.f32.vlgmr.msra.gmra.mxu1 %vm156_vm8, %v609_v2 }
 0x83c   :  { %742 = vmatpush.msrb.mxu1 %v722_v41  ;;  %v110_v41 = vld [vmem:[%s2975_s2 + $0x78] sm:$0xff] }
 0x83d   :  { %983 = vmatpush.msra.mxu0 %v110_v41 }
 0x83e   :  { %854 = vmatpush.msra.mxu1 %v2545_v7  ;;  %v890_v7 = vmul.f32 0.5, %v889_v17 }
 0x83f   :  { %984 = vmatpush.msra.mxu0 %v109_v42 }
 0x840   :  { %v891_v18 = vsub.f32 1.5, %v890_v7 }
 0x841   :  { %985 = vmatpush.msra.mxu0 %v108_v43 }
 0x842   :  { %v892_v20 = vmul.f32 %v2259_v12, %v891_v18 }
 0x843   :  { %2107 = vmatmul.msk.f32.vlgmr.msrb.gmra.mxu1 %vm156_vm8, %v720_v4  ;;  %986 = vmatpush.msra.mxu0 %v107_v45 }
 0x844   :  { %v896_v24 = vsel %vm895_vm11, %v2259_v12, %v892_v20 }
 0x845   :  { %v907_v27 = vmul.f32 %v896_v24, %v873_v51  ;;  %v2117_v24 = vld [vmem:[%s2975_s2 + $0x100] sm:$0xff] }
 0x847   :  { %v910_v30 = vmul.f32 %v2604_v26, %v907_v27 }
 0x849   :  { %v913_v32 = vadd.f32 %v2611_v31, %v910_v30 }
 0x89f   :  { %v801_v8 = vpop.xlane.xlu0 %800 }
 0x8a0   :  { %v802_v9 = vsub.f32 %v797_v61, %v801_v8 }
 0x8a2   :  { %v803_v11 = vmul.f32 1.442695, %v802_v9 }
 0x8a4   :  { %2260 = vpow2.f32 %v803_v11 }
 0x8aa   :  { %v2261_v14 = vpop.eup %2260 }
 0x8ab   :  { %v805_v16 = vsel %vm156_vm8, %v2261_v14, 0.0 }
 0x8ac   :  { %806 = vadd.xlane.f32.xlu1 %v805_v16 }
 0x8b8   :  { %v633_v21 = vpop.f32.mrf.mxu1 }
 0x8b9   :  { %2103 = vmatmul.msk.f32.vlgmr.msrb.gmra.mxu3 %vm156_vm8, %v633_v21  ;;  %v2119_v21 = vld [vmem:[%s2975_s2 + $0x140] sm:$0xff] }
 0x8ba   :  { %934 = vmatpush.msrb.mxu3 %v106_v19 }
 0x8bc   :  { %935 = vmatpush.msrb.mxu3 %v105_v22 }
 0x8be   :  { %936 = vmatpush.msrb.mxu3 %v104_v23  ;;  %v2118_v23 = vld [vmem:[%s2975_s2 + $0x120] sm:$0xff] }
 0x8c0   :  { %v744_v28 = vpop.f32.mrf.mxu1  ;;  %937 = vmatpush.msrb.mxu3 %v103_v25 }
 0x8c1   :  { %2108 = vmatmul.msk.f32.vlgmr.msra.gmra.mxu3 %vm156_vm8, %v744_v28 }
 0x8c9   :  { %2113 = vmatmul.msk.f32.vlgmr.msrb.gmra.mxu3 %vm28_vm0, %v913_v32 }
 0x91f   :  { %v807_v33 = vpop.xlane.xlu1 %806 }
 0x920   :  { %2262 = vrcp.f32 %v807_v33 }
 0x926   :  { %v2263_v34 = vpop.eup %2262 }
 0x927   :  { %v809_v35 = vmul.f32 %v2263_v34, %v2261_v14 }
 0x929   :  { %2111 = vmatmul.msk.f32.vlgmr.msra.gmra.mxu2 %vm156_vm8, %v809_v35 }
 0x93c   :  { %v656_v39 = vpop.f32.mrf.mxu3 }
 0x93d   :  { %v680_v50 = vadd.f32 %v2579_v57, %v656_v39 }
 0x944   :  { %v767_v44 = vpop.f32.mrf.mxu3 }
 0x945   :  { %v770_v46 = vadd.f32 %v767_v44, %v680_v50 }
 0x94c   :  { %v939_v48 = vpop.f32.mrf.mxu3 }
 0x94d   :  { %v940_v49 = vadd.f32 %v2644_v47, %v939_v48  ;;  %v2682_v48 = vld [vmem:[%s2976_s3 + $0x6] ss:$0 sm:$0xff] }
 0x94f   :  { %v945_v51 = vmul.f32 %v940_v49, %v940_v49 }
 0x951   :  { %v947_v53 = vmul.f32 %v945_v51, %v940_v49 }
 0x953   :  { %v949_v54 = vmul.f32 0.044715, %v947_v53 }
 0x955   :  { %v951_v56 = vadd.f32 %v949_v54, %v940_v49 }
 0x957   :  { %v953_v57 = vmul.f32 0.7978846, %v951_v56 }
 0x959   :  { %2264 = vtanh.f32 %v953_v57 }
 0x95f   :  { %v2265_v58 = vpop.eup %2264 }
 0x960   :  { %v957_v59 = vadd.f32 1.0, %v2265_v58 }
 0x962   :  { %v959_v61 = vmul.f32 0.5, %v957_v59  ;;  %v2700_v59 = vld [vmem:[%s2976_s3 + $0x8] ss:$0 sm:$0xff] }
 0x964   :  { %v961_v62 = vmul.f32 %v959_v61, %v940_v49 }
 0x966   :  { %2115 = vmatmul.msk.f32.vlgmr.msra.gmra.mxu0 %vm964_vm12, %v961_v62 }
 0x9ac   :  { %v833_v63 = vpop.f32.mrf.mxu2 }
 0x9ad   :  { %2112 = vmatmul.msk.f32.vlgmr.msra.gmra.mxu1 %vm156_vm8, %v833_v63 }
 0x9e3   :  { %v988_v2 = vpop.f32.mrf.mxu0 }
 0x9e4   :  { %v989_v3 = vadd.f32 %v2652_v0, %v988_v2 }
 0x9e6   :  { %v994_v15 = vadd.f32 %v989_v3, %v913_v32 }
 0x9e8   :  { %v996_v4 = vsel %vm28_vm0, %v994_v15, 0.0 }
 0x9e9   :  { %997 = vadd.xlane.f32.xlu2 %v996_v4 }
 0xa2a   :  { %v856_v55 = vpop.f32.mrf.mxu1 }
 0xa2b   :  { %v859_v5 = vadd.f32 %v856_v55, %v770_v46 }
 0xa2d   :  { %v862_v6 = vadd.f32 %v2560_v29, %v859_v5 }
 0xa2f   :  { %v864_v8 = vadd.f32 %v862_v6, %v2433_v52  ;;  %v2120_v52 = vld [vmem:[%s2975_s2 + $0x160] sm:$0xff] }
 0xa30   :  { %1095 = vmatpush.msrb.mxu2 %v2120_v52 }
 0xa31   :  { %v868_v9 = vsel %vm28_vm0, %v864_v8, 0.0 }
 0xa32   :  { %869 = vadd.xlane.f32.xlu1 %v868_v9  ;;  %1096 = vmatpush.msrb.mxu2 %v2119_v21 }
 0xa34   :  { %1097 = vmatpush.msrb.mxu2 %v2118_v23 }
 0xa36   :  { %1098 = vmatpush.msrb.mxu2 %v2117_v24 }
 0xa5c   :  { %v998_v11 = vpop.xlane.xlu2 %997 }
 0xa5d   :  { %v1002_v14 = vmul.f32 %v998_v11, %v2403_v10 }
 0xa5f   :  { %v1004_v7 = vsub.f32 %v994_v15, %v1002_v14 }
 0xa61   :  { %v1006_v19 = vmul.f32 %v1004_v7, %v1004_v7 }
 0xa63   :  { %v1008_v29 = vsel %vm28_vm0, %v1006_v19, 0.0 }
 0xaa5   :  { %v870_v12 = vpop.xlane.xlu1 %869 }
 0xaa6   :  { %v872_v13 = vmul.f32 %v870_v12, %v2403_v10 }
 0xaa8   :  { %v874_v16 = vsub.f32 %v864_v8, %v872_v13 }
 0xaaa   :  { %v876_v17 = vmul.f32 %v874_v16, %v874_v16 }
 0xaac   :  { %v880_v18 = vsel %vm28_vm0, %v876_v17, 0.0 }
 0xaad   :  { %881 = vadd.xlane.f32.xlu1 %v880_v18 }
 0xab5   :  { %1009 = vadd.xlane.f32.xlu1 %v1008_v29 }
 0xb20   :  { %v882_v20 = vpop.xlane.xlu1 %881 }
 0xb21   :  { %v884_v22 = vmul.f32 %v882_v20, %v2403_v10 }
 0xb23   :  { %v886_v25 = vadd.f32 1e-12, %v884_v22 }
 0xb25   :  { %2266 = vrsqrt.f32 %v886_v25  ;;  %vm903_vm14 = vweird.f32 %v886_v25 }
 0xb28   :  { %v1010_v27 = vpop.xlane.xlu1 %1009 }
 0xb29   :  { %v1014_v28 = vmul.f32 %v1010_v27, %v2403_v10 }
 0xb2b   :  { %v2267_v30 = vpop.eup %2266  ;;  %v1016_v32 = vadd.f32 1e-12, %v1014_v28 }
 0xb2c   :  { %v898_v33 = vmul.f32 %v2267_v30, %v886_v25  ;;  %vm904_vm13 = vweird.f32 %v2267_v30 }
 0xb2d   :  { %2268 = vrsqrt.f32 %v1016_v32  ;;  %vm905_vm15 = vmor %vm903_vm14, %vm904_vm13  ;;  %vm1024_vm2 = vweird.f32 %v1016_v32 }
 0xb2e   :  { %v899_v34 = vmul.f32 %v2267_v30, %v898_v33 }
 0xb30   :  { %v900_v35 = vmul.f32 0.5, %v899_v34 }
 0xb32   :  { %v901_v36 = vsub.f32 1.5, %v900_v35 }
 0xb33   :  { %v2269_v37 = vpop.eup %2268 }
 0xb34   :  { %v902_v38 = vmul.f32 %v2267_v30, %v901_v36  ;;  %v1019_v39 = vmul.f32 %v2269_v37, %v1016_v32  ;;  %vm1025_vm1 = vweird.f32 %v2269_v37 }
 0xb35   :  { %vm1026_vm3 = vmor %vm1024_vm2, %vm1025_vm1 }
 0xb36   :  { %v906_v40 = vsel %vm905_vm15, %v2267_v30, %v902_v38  ;;  %v1020_v41 = vmul.f32 %v2269_v37, %v1019_v39 }
 0xb37   :  { %v908_v42 = vmul.f32 %v906_v40, %v874_v16 }
 0xb38   :  { %v1021_v50 = vmul.f32 0.5, %v1020_v41 }
 0xb39   :  { %v911_v43 = vmul.f32 %v2604_v26, %v908_v42  ;;  %v2688_v26 = vld [vmem:[%s2976_s3 + $0x7] ss:$0 sm:$0xff] }
 0xb3a   :  { %v1022_v44 = vsub.f32 1.5, %v1021_v50 }
 0xb3b   :  { %v914_v45 = vadd.f32 %v2611_v31, %v911_v43 }
 0xb3c   :  { %v1023_v46 = vmul.f32 %v2269_v37, %v1022_v44 }
 0xb3d   :  { %2114 = vmatmul.msk.f32.gmra.mxu3 %vm28_vm0, %v914_v45 }
 0xb3e   :  { %v1027_v49 = vsel %vm1026_vm3, %v2269_v37, %v1023_v46 }
 0xb3f   :  { %v1038_v51 = vmul.f32 %v1027_v49, %v1004_v7 }
 0xb41   :  { %v1041_v53 = vmul.f32 %v2682_v48, %v1038_v51 }
 0xb43   :  { %v2692_v31 = vadd.f32 %v2688_v26, %v1041_v53 }
 0xb45   :  { %2145 = vmatmul.msk.f32.vlgmr.msrb.gmra.mxu2 %vm28_vm0, %v2692_v31 }
 0xbc0   :  { %v942_v54 = vpop.f32.mrf.mxu3 }
 0xbc1   :  { %v943_v56 = vadd.f32 %v2644_v47, %v942_v54 }
 0xbc3   :  { %v946_v57 = vmul.f32 %v943_v56, %v943_v56 }
 0xbc5   :  { %v948_v58 = vmul.f32 %v946_v57, %v943_v56 }
 0xbc7   :  { %v950_v61 = vmul.f32 0.044715, %v948_v58 }
 0xbc8   :  { %v1100_v62 = vpop.f32.mrf.mxu2 }
 0xbc9   :  { %v952_v63 = vadd.f32 %v950_v61, %v943_v56  ;;  %v2703_v2 = vadd.f32 %v2700_v59, %v1100_v62 }
 0xbcb   :  { %1281 = vrot.lane.b32.xlu2 %v2703_v2, %s2353_s19  ;;  %1170 = vrot.lane.b32.xlu1 %v2703_v2, %s2348_s14  ;;  %v954_v47 = vmul.f32 0.7978846, %v952_v63  ;;  %v2121_v63 = vld [vmem:[%s2975_s2 + $0x108] sm:$0xff] }
 0xbcc   :  { %1172 = vrot.lane.b32.xlu0 %v2703_v2, %s2351_s17 }
 0xbcd   :  { %2270 = vtanh.f32 %v954_v47 }
 0xbd3   :  { %v2271_v3 = vpop.eup %2270 }
 0xbd4   :  { %1283 = vrot.lane.b32.xlu0 %v2703_v2, %s2352_s18  ;;  %v958_v15 = vadd.f32 1.0, %v2271_v3 }
 0xbd6   :  { %v960_v4 = vmul.f32 0.5, %v958_v15 }
 0xbd8   :  { %v962_v55 = vmul.f32 %v960_v4, %v943_v56 }
 0xbda   :  { %2116 = vmatmul.msk.f32.gmra.mxu0 %vm964_vm12, %v962_v55 }
 0xbdc   :  { %1107 = vrot.lane.b32.xlu0 %v2703_v2, %s2349_s15 }
 0xc25   :  { %v1282_v9 = vpop.permute.xlu2 %1281 }
 0xc3d   :  { %v1171_v6 = vpop.permute.xlu1 %1170 }
 0xc3e   :  { %v1173_v5 = vpop.permute.xlu0 %1172 }
 0xc3f   :  { %2150 = vmatpush.xpose.msk.msra.mxu3 %vm156_vm8, %v1173_v5 }
 0xc42   :  { %2151 = vmatmul.msk.f32.vlgmr.msra.gmra.mxu3 %vm156_vm8, %v1171_v6 }
 0xc43   :  { %1276 = vmatpush.msrb.mxu3 %v2121_v63 }
 0xc46   :  { %v1284_v8 = vpop.permute.xlu0 %1283 }
 0xc47   :  { %2155 = vmatpush.xpose.msk.msrb.mxu0 %vm156_vm8, %v1284_v8 }
 0xc4a   :  { %2156 = vmatmul.msk.f32.vlgmr.msrb.gmra.mxu0 %vm156_vm8, %v1282_v9 }
 0xc4e   :  { %v1108_v11 = vpop.permute.xlu0 %1107 }
 0xc4f   :  { %2147 = vmatpush.xpose.msk.msrb.mxu1 %vm156_vm8, %v1108_v11 }
 0xc52   :  { %2148 = vmatmul.msk.f32.vlgmr.msrb.gmra.mxu1 %vm156_vm8, %v2703_v2 }
 0xc57   :  { %v991_v12 = vpop.f32.mrf.mxu0 }
 0xc58   :  { %v992_v13 = vadd.f32 %v2652_v0, %v991_v12 }
 0xc5a   :  { %v995_v14 = vadd.f32 %v992_v13, %v914_v45 }
 0xc5c   :  { %v999_v16 = vsel %vm28_vm0, %v995_v14, 0.0 }
 0xc5d   :  { %1000 = vadd.xlane.f32.xlu1 %v999_v16  ;;  %v2122_v16 = vld [vmem:[%s2975_s2 + $0x128] sm:$0xff] }
 0xcc5   :  { %v1195_v17 = vpop.f32.mrf.mxu3 }
 0xcc6   :  { %v1196_v7 = vadd.f32 %v2462_v60, %v1195_v17  ;;  %v2123_v17 = vld [vmem:[%s2975_s2 + $0x148] sm:$0xff] }
 0xcc7   :  { %v1306_v18 = vpop.f32.mrf.mxu0 }
 0xcc8   :  { %v1307_v19 = vadd.f32 %v2462_v60, %v1306_v18  ;;  %v1198_v29 = vsel %vm156_vm8, %v1196_v7, -inf }
 0xcc9   :  { %1199 = vmax.xlane.f32.xlu0 %v1198_v29 }
 0xcca   :  { %v1309_v52 = vsel %vm156_vm8, %v1307_v19, -inf }
 0xccb   :  { %1310 = vmax.xlane.f32.xlu1 %v1309_v52 }
 0xccf   :  { %v1130_v24 = vpop.f32.mrf.mxu1 }
 0xcd0   :  { %v1001_v20 = vpop.xlane.xlu1 %1000  ;;  %v1131_v25 = vadd.f32 %v2462_v60, %v1130_v24 }
 0xcd1   :  { %v1003_v21 = vmul.f32 %v1001_v20, %v2403_v10 }
 0xcd2   :  { %v1133_v27 = vsel %vm156_vm8, %v1131_v25, -inf }
 0xcd3   :  { %v1005_v0 = vsub.f32 %v995_v14, %v1003_v21 }
 0xcd5   :  { %v1007_v22 = vmul.f32 %v1005_v0, %v1005_v0 }
 0xcd7   :  { %v1011_v23 = vsel %vm28_vm0, %v1007_v22, 0.0 }
 0xcd8   :  { %1012 = vadd.xlane.f32.xlu2 %v1011_v23 }
 0xce0   :  { %1134 = vmax.xlane.f32.xlu2 %v1133_v27 }
 0xd3c   :  { %v1200_v28 = vpop.xlane.xlu0 %1199 }
 0xd3d   :  { %v1201_v30 = vsub.f32 %v1196_v7, %v1200_v28 }
 0xd3e   :  { %v1311_v32 = vpop.xlane.xlu1 %1310 }
 0xd3f   :  { %v1202_v33 = vmul.f32 1.442695, %v1201_v30  ;;  %v1312_v34 = vsub.f32 %v1307_v19, %v1311_v32  ;;  %v2320_v30 = vld [vmem:[%s2974_s1] ss:$0 sm:$0xff] }
 0xd41   :  { %2272 = vpow2.f32 %v1202_v33  ;;  %v1313_v35 = vmul.f32 1.442695, %v1312_v34 }
 0xd43   :  { %2274 = vpow2.f32 %v1313_v35 }
 0xd47   :  { %v2273_v36 = vpop.eup %2272 }
 0xd48   :  { %v1204_v37 = vsel %vm156_vm8, %v2273_v36, 0.0 }
 0xd49   :  { %v2275_v38 = vpop.eup %2274  ;;  %1205 = vadd.xlane.f32.xlu0 %v1204_v37 }
 0xd4a   :  { %v1315_v39 = vsel %vm156_vm8, %v2275_v38, 0.0 }
 0xd4b   :  { %1316 = vadd.xlane.f32.xlu1 %v1315_v39  ;;  %v1013_v60 = vpop.xlane.xlu2 %1012 }
 0xd4c   :  { %v1015_v40 = vmul.f32 %v1013_v60, %v2403_v10 }
 0xd4e   :  { %v1017_v41 = vadd.f32 1e-12, %v1015_v40 }
 0xd50   :  { %2276 = vrsqrt.f32 %v1017_v41  ;;  %vm1034_vm5 = vweird.f32 %v1017_v41 }
 0xd53   :  { %v1135_v42 = vpop.xlane.xlu2 %1134 }
 0xd54   :  { %v1136_v50 = vsub.f32 %v1131_v25, %v1135_v42 }
 0xd56   :  { %v2277_v43 = vpop.eup %2276  ;;  %v1137_v44 = vmul.f32 1.442695, %v1136_v50 }
 0xd57   :  { %v1029_v45 = vmul.f32 %v2277_v43, %v1017_v41  ;;  %vm1035_vm4 = vweird.f32 %v2277_v43 }
 0xd58   :  { %2278 = vpow2.f32 %v1137_v44  ;;  %vm1036_vm6 = vmor %vm1034_vm5, %vm1035_vm4  ;;  %vm2012_vm4 = vcmask 1041409  }
 0xd59   :  { %v1030_v46 = vmul.f32 %v2277_v43, %v1029_v45 }
 0xd5b   :  { %v1031_v49 = vmul.f32 0.5, %v1030_v46 }
 0xd5d   :  { %v1032_v51 = vsub.f32 1.5, %v1031_v49  ;;  %1209 = vrot.lane.b32.xlu0 %v2703_v2, %s2354_s22 }
 0xd5e   :  { %v2279_v53 = vpop.eup %2278 }
 0xd5f   :  { %v1033_v54 = vmul.f32 %v2277_v43, %v1032_v51  ;;  %v1139_v56 = vsel %vm156_vm8, %v2279_v53, 0.0 }
 0xd60   :  { %1140 = vadd.xlane.f32.xlu2 %v1139_v56 }
 0xd61   :  { %v1037_v57 = vsel %vm1036_vm6, %v2277_v43, %v1033_v54 }
 0xd62   :  { %v1039_v58 = vmul.f32 %v1037_v57, %v1005_v0 }
 0xd64   :  { %1320 = vrot.lane.b32.xlu1 %v2703_v2, %s2355_s23  ;;  %v1042_v61 = vmul.f32 %v2682_v48, %v1039_v58 }
 0xd65   :  { %1144 = vrot.lane.b32.xlu0 %v2703_v2, %s2350_s16 }
 0xd66   :  { %v2745_v62 = vadd.f32 %v2688_v26, %v1042_v61  ;;  %v2124_v61 = vld [vmem:[%s2975_s2 + $0x168] sm:$0xff] }
 0xd68   :  { %2146 = vmatmul.msk.f32.gmra.mxu2 %vm28_vm0, %v2745_v62 }
 0xd6c   :  { %1372 = vrot.lane.b32.xlu1 %v2703_v2, %s2357_s30 }
 0xd6d   :  { %1370 = vrot.lane.b32.xlu0 %v2703_v2, %s2356_s24 }
 0xdbc   :  { %v1206_v48 = vpop.xlane.xlu0 %1205 }
 0xdbd   :  { %2280 = vrcp.f32 %v1206_v48 }
 0xdbe   :  { %v1317_v47 = vpop.xlane.xlu1 %1316 }
 0xdbf   :  { %2282 = vrcp.f32 %v1317_v47 }
 0xdc3   :  { %v2281_v3 = vpop.eup %2280 }
 0xdc4   :  { %v1208_v26 = vmul.f32 %v2281_v3, %v2273_v36 }
 0xdc5   :  { %v2283_v55 = vpop.eup %2282 }
 0xdc6   :  { %v1319_v6 = vmul.f32 %v2283_v55, %v2275_v38 }
 0xdcf   :  { %v1210_v15 = vpop.permute.xlu0 %1209 }
 0xdd0   :  { %1230 = vmatpush.msra.mxu2 %v1210_v15 }
 0xdd1   :  { %2152 = vmatmul.msk.f32.vlgmr.msra.gmra.mxu2 %vm156_vm8, %v1208_v26 }
 0xdd3   :  { %v1141_v4 = vpop.xlane.xlu2 %1140 }
 0xdd4   :  { %2284 = vrcp.f32 %v1141_v4 }
 0xdd6   :  { %v1321_v5 = vpop.permute.xlu1 %1320 }
 0xdd7   :  { %1341 = vmatpush.msrb.mxu2 %v1321_v5  ;;  %v1145_v8 = vpop.permute.xlu0 %1144 }
 0xdd8   :  { %1165 = vmatpush.msra.mxu1 %v1145_v8 }
 0xdd9   :  { %2157 = vmatmul.msk.f32.vlgmr.msrb.gmra.mxu2 %vm156_vm8, %v1319_v6 }
 0xdda   :  { %v2285_v9 = vpop.eup %2284  ;;  %1253 = vmatpush.msrb.mxu1 %v2122_v16  ;;  %1453 = vmatpush.msra.mxu2 %v2124_v61 }
 0xddb   :  { %v1143_v11 = vmul.f32 %v2285_v9, %v2279_v53 }
 0xddd   :  { %2149 = vmatmul.msk.f32.vlgmr.msra.gmra.mxu1 %vm156_vm8, %v1143_v11 }
 0xdde   :  { %v1373_v12 = vpop.permute.xlu1 %1372  ;;  %1364 = vmatpush.msra.mxu1 %v2123_v17 }
 0xddf   :  { %2159 = vmatpush.xpose.msk.msra.mxu3 %vm156_vm8, %v1373_v12  ;;  %v1371_v52 = vpop.permute.xlu0 %1370 }
 0xdeb   :  { %v1103_v13 = vpop.f32.mrf.mxu2 }
 0xdec   :  { %v2761_v14 = vadd.f32 %v2700_v59, %v1103_v13 }
 0xdee   :  { %1460 = vrot.lane.b32.xlu2 %v2761_v14, %s2349_s15 }
 0xdf6   :  { %1497 = vrot.lane.b32.xlu2 %v2761_v14, %s2350_s16 }
 0xe48   :  { %v1461_v7 = vpop.permute.xlu2 %1460 }
 0xe50   :  { %v1498_v19 = vpop.permute.xlu2 %1497 }
 0xe54   :  { %v1232_v18 = vpop.f32.mrf.mxu2 }
 0xe55   :  { %2153 = vmatmul.msk.f32.vlgmr.msrb.gmra.mxu1 %vm156_vm8, %v1232_v18 }
 0xe56   :  { %2163 = vmatpush.xpose.msk.msrb.mxu1 %vm156_vm8, %v1461_v7 }
 0xe5a   :  { %v1167_v59 = vpop.f32.mrf.mxu1 }
 0xe5b   :  { %2154 = vmatmul.msk.f32.vlgmr.msrb.gmra.mxu3 %vm156_vm8, %v1167_v59 }
 0xe5c   :  { %v1343_v29 = vpop.f32.mrf.mxu2  ;;  %1518 = vmatpush.msrb.mxu3 %v1498_v19 }
 0xe5d   :  { %2158 = vmatmul.msk.f32.vlgmr.msra.gmra.mxu1 %vm156_vm8, %v1343_v29 }
 0xe5e   :  { %1606 = vmatpush.msra.mxu1 %v2122_v16 }
 0xe63   :  { %2160 = vmatmul.msk.f32.vlgmr.msra.gmra.mxu3 %vm156_vm8, %v1371_v52 }
 0xe64   :  { %1629 = vmatpush.msra.mxu3 %v2121_v63 }
 0xe65   :  { %2164 = vmatmul.msk.f32.vlgmr.msrb.gmra.mxu1 %vm156_vm8, %v2761_v14 }
 0xe66   :  { %1717 = vmatpush.msrb.mxu1 %v2123_v17 }
 0xed2   :  { %v1255_v20 = vpop.f32.mrf.mxu1 }
 0xeda   :  { %v1366_v21 = vpop.f32.mrf.mxu1 }
 0xede   :  { %v1278_v0 = vpop.f32.mrf.mxu3 }
 0xedf   :  { %v1279_v22 = vadd.f32 %v1278_v0, %v1255_v20  ;;  %v2835_v20 = vld [vmem:[%s2976_s3 + $0x9] ss:$0 sm:$0xff] }
 0xee1   :  { %v2780_v23 = vadd.f32 %v1366_v21, %v1279_v22 }
 0xee2   :  { %v1483_v24 = vpop.f32.mrf.mxu1 }
 0xee3   :  { %v1484_v25 = vadd.f32 %v2529_v1, %v1483_v24 }
 0xee5   :  { %v1486_v27 = vsel %vm156_vm8, %v1484_v25, -inf }
 0xee6   :  { %1487 = vmax.xlane.f32.xlu1 %v1486_v27  ;;  %v1395_v28 = vpop.f32.mrf.mxu3 }
 0xee7   :  { %v1396_v32 = vadd.f32 %v2320_v30, %v1395_v28 }
 0xee9   :  { %v1398_v33 = vsel %vm156_vm8, %v1396_v32, -inf }
 0xeea   :  { %1399 = vmax.xlane.f32.xlu2 %v1398_v33 }
 0xf02   :  { %1523 = vrot.lane.b32.xlu2 %v2761_v14, %s2348_s14 }
 0xf59   :  { %v1488_v34 = vpop.xlane.xlu1 %1487 }
 0xf5a   :  { %v1489_v35 = vsub.f32 %v1484_v25, %v1488_v34 }
 0xf5c   :  { %v1490_v36 = vmul.f32 1.442695, %v1489_v35 }
 0xf5d   :  { %v1400_v37 = vpop.xlane.xlu2 %1399 }
 0xf5e   :  { %2286 = vpow2.f32 %v1490_v36  ;;  %v1401_v38 = vsub.f32 %v1396_v32, %v1400_v37 }
 0xf60   :  { %v1402_v39 = vmul.f32 1.442695, %v1401_v38 }
 0xf62   :  { %2288 = vpow2.f32 %v1402_v39 }
 0xf64   :  { %v2287_v60 = vpop.eup %2286 }
 0xf65   :  { %v1492_v40 = vsel %vm156_vm8, %v2287_v60, 0.0  ;;  %v1524_v54 = vpop.permute.xlu2 %1523 }
 0xf66   :  { %1493 = vadd.xlane.f32.xlu0 %v1492_v40 }
 0xf68   :  { %v2289_v41 = vpop.eup %2288 }
 0xf69   :  { %v1404_v42 = vsel %vm156_vm8, %v2289_v41, 0.0 }
 0xf6a   :  { %1405 = vadd.xlane.f32.xlu1 %v1404_v42 }
 0xf7a   :  { %1409 = vrot.lane.b32.xlu0 %v2703_v2, %s2358_s7 }
 0xf82   :  { %1725 = vrot.lane.b32.xlu0 %v2761_v14, %s2357_s30  ;;  %s2069_s30 = sshll.u32 %s2979_s6, 4  ;;  %s2070_s30 = int_to_ptr.hbm [resolvable:$true] %s2069_s30 }
 0xf83   :  { %1525 = vrot.lane.b32.xlu1 %v2761_v14, %s2351_s17 }
 0xf8a   :  { %1723 = vrot.lane.b32.xlu0 %v2761_v14, %s2356_s24 }
 0xf8b   :  { %1636 = vrot.lane.b32.xlu1 %v2761_v14, %s2352_s18 }
 0xf92   :  { %1634 = vrot.lane.b32.xlu0 %v2761_v14, %s2353_s19 }
 0xfd9   :  { %v1494_v50 = vpop.xlane.xlu0 %1493 }
 0xfda   :  { %2290 = vrcp.f32 %v1494_v50 }
 0xfdd   :  { %v1406_v44 = vpop.xlane.xlu1 %1405 }
 0xfde   :  { %2292 = vrcp.f32 %v1406_v44 }
 0xfe0   :  { %v2291_v43 = vpop.eup %2290 }
 0xfe1   :  { %v1496_v2 = vmul.f32 %v2291_v43, %v2287_v60 }
 0xfe3   :  { %2165 = vmatmul.msk.f32.vlgmr.msrb.gmra.mxu3 %vm156_vm8, %v1496_v2 }
 0xfe4   :  { %v2293_v45 = vpop.eup %2292 }
 0xfe5   :  { %v1408_v46 = vmul.f32 %v2293_v45, %v2289_v41  ;;  %v2128_v45 = vld [vmem:[%s2975_s2 + $0x170] sm:$0xff] }
 0xfec   :  { %v1410_v49 = vpop.permute.xlu0 %1409 }
 0xfed   :  { %1430 = vmatpush.msra.mxu0 %v1410_v49  ;;  %v2126_v49 = vld [vmem:[%s2975_s2 + $0x130] sm:$0xff] }
 0xfee   :  { %2161 = vmatmul.msk.f32.vlgmr.msra.gmra.mxu0 %vm156_vm8, %v1408_v46  ;;  %v2127_v46 = vld [vmem:[%s2975_s2 + $0x150] sm:$0xff] }
 0xff4   :  { %v1726_v51 = vpop.permute.xlu0 %1725 }
 0xff5   :  { %2175 = vmatpush.xpose.msk.msrb.mxu3 %vm156_vm8, %v1726_v51  ;;  %v1526_v53 = vpop.permute.xlu1 %1525  ;;  %v2125_v51 = vld [vmem:[%s2975_s2 + $0x110] sm:$0xff] }
 0xff6   :  { %2166 = vmatpush.xpose.msk.msrb.mxu0 %vm156_vm8, %v1526_v53 }
 0xff9   :  { %2167 = vmatmul.msk.f32.vlgmr.msrb.gmra.mxu0 %vm156_vm8, %v1524_v54 }
 0xffc   :  { %v1724_v56 = vpop.permute.xlu0 %1723 }
 0xffd   :  { %v1637_v57 = vpop.permute.xlu1 %1636 }
 0xffe   :  { %2171 = vmatpush.xpose.msk.msra.mxu0 %vm156_vm8, %v1637_v57 }
0x1004   :  { %v1635_v58 = vpop.permute.xlu0 %1634 }
0x1005   :  { %2172 = vmatmul.msk.f32.vlgmr.msra.gmra.mxu0 %vm156_vm8, %v1635_v58 }
0x1066   :  { %v1520_v63 = vpop.f32.mrf.mxu3 }
0x1067   :  { %2170 = vmatmul.msk.f32.vlgmr.msra.gmra.mxu3 %vm156_vm8, %v1520_v63 }
0x106b   :  { %v1432_v48 = vpop.f32.mrf.mxu0 }
0x106c   :  { %2162 = vmatmul.msk.f32.vlgmr.msra.gmra.mxu2 %vm156_vm8, %v1432_v48 }
0x106f   :  { %2176 = vmatmul.msk.f32.vlgmr.msrb.gmra.mxu3 %vm156_vm8, %v1724_v56 }
0x1076   :  { %v1548_v47 = vpop.f32.mrf.mxu0 }
0x1077   :  { %v1549_v3 = vadd.f32 %v2529_v1, %v1548_v47 }
0x1079   :  { %v1551_v26 = vsel %vm156_vm8, %v1549_v3, -inf }
0x107a   :  { %1552 = vmax.xlane.f32.xlu1 %v1551_v26 }
0x1082   :  { %v1659_v15 = vpop.f32.mrf.mxu0 }
0x1083   :  { %v1660_v4 = vadd.f32 %v2529_v1, %v1659_v15 }
0x1085   :  { %v1662_v55 = vsel %vm156_vm8, %v1660_v4, -inf }
0x1086   :  { %1663 = vmax.xlane.f32.xlu2 %v1662_v55 }
0x10ea   :  { %v2821_v5 = vpop.f32.mrf.mxu3 }
0x10ed   :  { %v1553_v6 = vpop.xlane.xlu1 %1552 }
0x10ee   :  { %v1554_v8 = vsub.f32 %v1549_v3, %v1553_v6  ;;  %v2866_v3 = vld [vmem:[%s2976_s3 + $0xa] ss:$0 sm:$0xff] }
0x10f0   :  { %v1555_v9 = vmul.f32 1.442695, %v1554_v8 }
0x10f2   :  { %2294 = vpow2.f32 %v1555_v9  ;;  %v1748_v11 = vpop.f32.mrf.mxu3 }
0x10f3   :  { %v1749_v12 = vadd.f32 %v2529_v1, %v1748_v11  ;;  %v1455_v1 = vpop.f32.mrf.mxu2 }
0x10f4   :  { %v1458_v52 = vadd.f32 %v1455_v1, %v2780_v23  ;;  %v2218_v1 = vld [vmem:[%s2976_s3 + $0xc] ss:$0 sm:$0xff] }
0x10f5   :  { %v1751_v13 = vsel %vm156_vm8, %v1749_v12, -inf }
0x10f6   :  { %1752 = vmax.xlane.f32.xlu0 %v1751_v13  ;;  %v1813_v21 = vadd.f32 %v2835_v20, %v1458_v52 }
0x10f8   :  { %v2295_v16 = vpop.eup %2294  ;;  %v1815_v0 = vadd.f32 %v1813_v21, %v2692_v31 }
0x10f9   :  { %v1664_v17 = vpop.xlane.xlu2 %1663  ;;  %v1557_v7 = vsel %vm156_vm8, %v2295_v16, 0.0 }
0x10fa   :  { %v1665_v18 = vsub.f32 %v1660_v4, %v1664_v17  ;;  %1558 = vadd.xlane.f32.xlu1 %v1557_v7  ;;  %v1817_v22 = vsel %vm28_vm0, %v1815_v0, 0.0  ;;  %v2871_v4 = vld [vmem:[%s2976_s3 + $0xb] ss:$0 sm:$0xff]  ;;  %v2135_v17 = vld [vmem:[%s2975_s2 + $0x1d8] sm:$0xff] }
0x10fb   :  { %v2134_v7 = vld [vmem:[%s2975_s2 + $0x1b8] sm:$0xff] }
0x10fc   :  { %v1666_v59 = vmul.f32 1.442695, %v1665_v18  ;;  %v2132_v18 = vld [vmem:[%s2975_s2 + $0x178] sm:$0xff] }
0x10fe   :  { %2296 = vpow2.f32 %v1666_v59  ;;  %v2131_v59 = vld [vmem:[%s2975_s2 + $0x158] sm:$0xff] }
0x1104   :  { %v2297_v19 = vpop.eup %2296 }
0x1105   :  { %v1668_v29 = vsel %vm156_vm8, %v2297_v19, 0.0 }
0x1106   :  { %1669 = vadd.xlane.f32.xlu2 %v1668_v29  ;;  %v2129_v29 = vld [vmem:[%s2975_s2 + $0x118] sm:$0xff] }
0x110a   :  { %1562 = vrot.lane.b32.xlu0 %v2761_v14, %s2354_s22 }
0x111e   :  { %1673 = vrot.lane.b32.xlu2 %v2761_v14, %s2355_s23  ;;  %s2359_s23 = smov [#allocation2]  }
0x111f   :  { %s2067_s24 = sshll.u32 %s2359_s23, 4  ;;  %s2068_s24 = int_to_ptr.vmem [resolvable:$true] %s2067_s24 }
0x1134   :  { %1818 = vadd.xlane.f32.xlu0 %v1817_v22 }
0x1169   :  { %v1753_v24 = vpop.xlane.xlu0 %1752 }
0x116a   :  { %v1754_v25 = vsub.f32 %v1749_v12, %v1753_v24 }
0x116c   :  { %v1755_v27 = vmul.f32 1.442695, %v1754_v25 }
0x116d   :  { %v1559_v28 = vpop.xlane.xlu1 %1558 }
0x116e   :  { %2298 = vpow2.f32 %v1755_v27 }
0x116f   :  { %2300 = vrcp.f32 %v1559_v28 }
0x1174   :  { %v2299_v30 = vpop.eup %2298 }
0x1175   :  { %v1757_v23 = vsel %vm156_vm8, %v2299_v30, 0.0  ;;  %v2301_v32 = vpop.eup %2300 }
0x1176   :  { %1758 = vadd.xlane.f32.xlu1 %v1757_v23  ;;  %v1561_v34 = vmul.f32 %v2301_v32, %v2295_v16  ;;  %v2136_v16 = vld [vmem:[%s2975_s2 + $0x1f8] sm:$0xff] }
0x1177   :  { %1930 = vmatpush.msra.mxu3 %v2136_v16 }
0x1179   :  { %v1670_v33 = vpop.xlane.xlu2 %1669  ;;  %1931 = vmatpush.msra.mxu3 %v2135_v17 }
0x117a   :  { %2302 = vrcp.f32 %v1670_v33 }
0x117b   :  { %1932 = vmatpush.msra.mxu3 %v2134_v7 }
0x117c   :  { %v1563_v35 = vpop.permute.xlu0 %1562 }
0x117d   :  { %1583 = vmatpush.msrb.mxu2 %v1563_v35 }
0x117e   :  { %2168 = vmatmul.msk.f32.vlgmr.msrb.gmra.mxu2 %vm156_vm8, %v1561_v34 }
0x1180   :  { %v2303_v31 = vpop.eup %2302 }
0x1181   :  { %v1674_v36 = vpop.permute.xlu2 %1673  ;;  %v1672_v37 = vmul.f32 %v2303_v31, %v2297_v19  ;;  %v2130_v19 = vld [vmem:[%s2975_s2 + $0x138] sm:$0xff] }
0x1182   :  { %1694 = vmatpush.msra.mxu2 %v1674_v36 }
0x1184   :  { %1806 = vmatpush.msrb.mxu2 %v2124_v61 }
0x1186   :  { %2173 = vmatmul.msk.f32.vlgmr.msra.gmra.mxu2 %vm156_vm8, %v1672_v37 }
0x118f   :  { %1762 = vrot.lane.b32.xlu1 %v2761_v14, %s2358_s7 }
0x11a7   :  { %v1819_v38 = vpop.xlane.xlu0 %1818 }
0x11a8   :  { %v1823_v39 = vmul.f32 %v1819_v38, %v2403_v10 }
0x11aa   :  { %v1825_v60 = vsub.f32 %v1815_v0, %v1823_v39  ;;  %v2219_v39 = vld [vmem:[%s2976_s3 + $0xd] ss:$0 sm:$0xff] }
0x11ac   :  { %v1827_v40 = vmul.f32 %v1825_v60, %v1825_v60 }
0x11ae   :  { %v1829_v41 = vsel %vm28_vm0, %v1827_v40, 0.0 }
0x11b9   :  { %1830 = vadd.xlane.f32.xlu1 %v1829_v41 }
0x11e9   :  { %v1759_v42 = vpop.xlane.xlu1 %1758 }
0x11ea   :  { %2304 = vrcp.f32 %v1759_v42 }
0x11f0   :  { %v2305_v50 = vpop.eup %2304 }
0x11f1   :  { %v1761_v43 = vmul.f32 %v2305_v50, %v2299_v30 }
0x1201   :  { %v1763_v44 = vpop.permute.xlu1 %1762  ;;  %v1585_v2 = vpop.f32.mrf.mxu2 }
0x1202   :  { %2169 = vmatmul.msk.f32.vlgmr.msra.gmra.mxu1 %vm156_vm8, %v1585_v2  ;;  %1783 = vmatpush.msrb.mxu0 %v1763_v44 }
0x1203   :  { %2177 = vmatmul.msk.f32.vlgmr.msrb.gmra.mxu0 %vm156_vm8, %v1761_v43  ;;  %1886 = vmatpush.msra.mxu1 %v2128_v45 }
0x1205   :  { %1887 = vmatpush.msra.mxu1 %v2127_v46 }
0x1207   :  { %1888 = vmatpush.msra.mxu1 %v2126_v49 }
0x1209   :  { %v1696_v14 = vpop.f32.mrf.mxu2  ;;  %1889 = vmatpush.msra.mxu1 %v2125_v51 }
0x120a   :  { %2174 = vmatmul.msk.f32.vlgmr.msrb.gmra.mxu1 %vm156_vm8, %v1696_v14 }
0x122c   :  { %v1831_v53 = vpop.xlane.xlu1 %1830 }
0x122d   :  { %v1835_v54 = vmul.f32 %v1831_v53, %v2403_v10 }
0x122f   :  { %v1837_v56 = vadd.f32 1e-12, %v1835_v54 }
0x1231   :  { %2306 = vrsqrt.f32 %v1837_v56  ;;  %vm1845_vm9 = vweird.f32 %v1837_v56 }
0x1237   :  { %v2307_v57 = vpop.eup %2306 }
0x1238   :  { %v1840_v58 = vmul.f32 %v2307_v57, %v1837_v56  ;;  %vm1846_vm7 = vweird.f32 %v2307_v57 }
0x1239   :  { %vm1847_vm10 = vmor %vm1845_vm9, %vm1846_vm7 }
0x123a   :  { %v1841_v61 = vmul.f32 %v2307_v57, %v1840_v58 }
0x123c   :  { %v1842_v63 = vmul.f32 0.5, %v1841_v61 }
0x123e   :  { %v1843_v48 = vsub.f32 1.5, %v1842_v63 }
0x1240   :  { %v1844_v47 = vmul.f32 %v2307_v57, %v1843_v48 }
0x1242   :  { %v1848_v26 = vsel %vm1847_vm10, %v2307_v57, %v1844_v47 }
0x1243   :  { %v1859_v15 = vmul.f32 %v1848_v26, %v1825_v60 }
0x1245   :  { %v1862_v55 = vmul.f32 %v2866_v3, %v1859_v15 }
0x1247   :  { %v1865_v6 = vadd.f32 %v2871_v4, %v1862_v55 }
0x1249   :  { %2179 = vmatmul.msk.f32.vlgmr.msra.gmra.mxu1 %vm28_vm0, %v1865_v6 }
0x127f   :  { %v1608_v8 = vpop.f32.mrf.mxu1 }
0x1280   :  { %v1785_v9 = vpop.f32.mrf.mxu0  ;;  %v1632_v11 = vadd.f32 %v2821_v5, %v1608_v8  ;;  %v2133_v5 = vld [vmem:[%s2975_s2 + $0x198] sm:$0xff] }
0x1281   :  { %2178 = vmatmul.msk.f32.vlgmr.msrb.gmra.mxu2 %vm156_vm8, %v1785_v9  ;;  %1933 = vmatpush.msra.mxu3 %v2133_v5 }
0x1283   :  { %1934 = vmatpush.msra.mxu3 %v2132_v18 }
0x1285   :  { %1935 = vmatpush.msra.mxu3 %v2131_v59 }
0x1287   :  { %v1719_v12 = vpop.f32.mrf.mxu1  ;;  %1936 = vmatpush.msra.mxu3 %v2130_v19 }
0x1288   :  { %v1722_v13 = vadd.f32 %v1719_v12, %v1632_v11 }
0x1289   :  { %1937 = vmatpush.msra.mxu3 %v2129_v29 }
0x12c6   :  { %v1891_v52 = vpop.f32.mrf.mxu1 }
0x12c7   :  { %v1892_v21 = vadd.f32 %v2218_v1, %v1891_v52 }
0x12c9   :  { %v1897_v0 = vmul.f32 %v1892_v21, %v1892_v21 }
0x12cb   :  { %v1899_v22 = vmul.f32 %v1897_v0, %v1892_v21 }
0x12cd   :  { %v1901_v24 = vmul.f32 0.044715, %v1899_v22 }
0x12cf   :  { %v1903_v25 = vadd.f32 %v1901_v24, %v1892_v21  ;;  %v2000_v24 = vld [vmem:[%s2977_s4 + $0x18] sm:$0xff] }
0x12d0   :  { %2028 = vmatpush.msra.mxu0 %v2000_v24 }
0x12d1   :  { %v1905_v27 = vmul.f32 0.7978846, %v1903_v25  ;;  %v1999_v25 = vld [vmem:[%s2977_s4 + $0x10] sm:$0xff] }
0x12d2   :  { %2029 = vmatpush.msra.mxu0 %v1999_v25 }
0x12d3   :  { %2308 = vtanh.f32 %v1905_v27 }
0x12d9   :  { %v2309_v28 = vpop.eup %2308 }
0x12da   :  { %v1909_v30 = vadd.f32 1.0, %v2309_v28  ;;  %v1998_v28 = vld [vmem:[%s2977_s4 + $0x8] sm:$0xff] }
0x12db   :  { %2030 = vmatpush.msra.mxu0 %v1998_v28 }
0x12dc   :  { %v1911_v23 = vmul.f32 0.5, %v1909_v30  ;;  %v1997_v30 = vld [vmem:[%s2977_s4] sm:$0xff] }
0x12dd   :  { %2031 = vmatpush.msra.mxu0 %v1997_v30 }
0x12de   :  { %v1913_v32 = vmul.f32 %v1911_v23, %v1892_v21 }
0x12e0   :  { %2181 = vmatmul.msk.f32.vlgmr.msra.gmra.mxu3 %vm964_vm12, %v1913_v32 }
0x1304   :  { %v1808_v33 = vpop.f32.mrf.mxu2 }
0x1305   :  { %v1811_v34 = vadd.f32 %v1808_v33, %v1722_v13 }
0x1307   :  { %v1814_v35 = vadd.f32 %v2835_v20, %v1811_v34 }
0x1309   :  { %v1816_v31 = vadd.f32 %v1814_v35, %v2745_v62 }
0x130b   :  { %v1820_v36 = vsel %vm28_vm0, %v1816_v31, 0.0 }
0x130c   :  { %1821 = vadd.xlane.f32.xlu2 %v1820_v36 }
0x1363   :  { %v1939_v40 = vpop.f32.mrf.mxu3 }
0x1364   :  { %v1940_v42 = vadd.f32 %v2219_v39, %v1939_v40 }
0x1366   :  { %v1945_v20 = vadd.f32 %v1940_v42, %v1865_v6 }
0x1368   :  { %v1947_v62 = vsel %vm28_vm0, %v1945_v20, 0.0 }
0x137f   :  { %v1822_v37 = vpop.xlane.xlu2 %1821 }
0x1380   :  { %v1824_v38 = vmul.f32 %v1822_v37, %v2403_v10 }
0x1382   :  { %v1826_v60 = vsub.f32 %v1816_v31, %v1824_v38 }
0x1384   :  { %v1828_v41 = vmul.f32 %v1826_v60, %v1826_v60 }
0x1386   :  { %v1832_v50 = vsel %vm28_vm0, %v1828_v41, 0.0 }
0x1387   :  { %1833 = vadd.xlane.f32.xlu0 %v1832_v50 }
0x138f   :  { %1948 = vadd.xlane.f32.xlu0 %v1947_v62 }
0x13fa   :  { %v1834_v43 = vpop.xlane.xlu0 %1833 }
0x13fb   :  { %v1836_v44 = vmul.f32 %v1834_v43, %v2403_v10 }
0x13fd   :  { %v1838_v2 = vadd.f32 1e-12, %v1836_v44 }
0x13ff   :  { %2310 = vrsqrt.f32 %v1838_v2  ;;  %vm1855_vm11 = vweird.f32 %v1838_v2 }
0x1402   :  { %v1949_v14 = vpop.xlane.xlu0 %1948 }
0x1403   :  { %v1953_v45 = vmul.f32 %v1949_v14, %v2403_v10  ;;  %v2221_v14 = vld [vmem:[%s2976_s3 + $0xf] ss:$0 sm:$0xff] }
0x1405   :  { %v2311_v46 = vpop.eup %2310  ;;  %v2917_v49 = vsub.f32 %v1945_v20, %v1953_v45 }
0x1406   :  { %v1850_v51 = vmul.f32 %v2311_v46, %v1838_v2  ;;  %vm1856_vm8 = vweird.f32 %v2311_v46 }
0x1407   :  { %v1957_v53 = vmul.f32 %v2917_v49, %v2917_v49  ;;  %vm1857_vm13 = vmor %vm1855_vm11, %vm1856_vm8 }
0x1408   :  { %v1851_v54 = vmul.f32 %v2311_v46, %v1850_v51 }
0x1409   :  { %v1959_v56 = vsel %vm28_vm0, %v1957_v53, 0.0 }
0x140a   :  { %v1852_v57 = vmul.f32 0.5, %v1851_v54  ;;  %1960 = vadd.xlane.f32.xlu0 %v1959_v56  ;;  %v2185_v54 = vld [vmem:[%s2977_s4 + $0x30] sm:$0xff]  ;;  %v2184_v56 = vld [vmem:[%s2977_s4 + $0x28] sm:$0xff] }
0x140c   :  { %v1853_v58 = vsub.f32 1.5, %v1852_v57  ;;  %v2183_v57 = vld [vmem:[%s2977_s4 + $0x20] sm:$0xff] }
0x140e   :  { %v1854_v61 = vmul.f32 %v2311_v46, %v1853_v58  ;;  %v2222_v58 = vld [vmem:[%s2978_s5 + $0x2] ss:$0 sm:$0xff] }
0x1410   :  { %v1858_v63 = vsel %vm1857_vm13, %v2311_v46, %v1854_v61 }
0x1411   :  { %v1860_v48 = vmul.f32 %v1858_v63, %v1826_v60 }
0x1413   :  { %v1863_v47 = vmul.f32 %v2866_v3, %v1860_v48 }
0x1415   :  { %v1866_v26 = vadd.f32 %v2871_v4, %v1863_v47  ;;  %v2223_v47 = vld [vmem:[%s2978_s5 + $0x3] ss:$0 sm:$0xff] }
0x1417   :  { %2180 = vmatmul.msk.f32.gmra.mxu1 %vm28_vm0, %v1866_v26 }
0x147d   :  { %v1961_v21 = vpop.xlane.xlu0 %1960 }
0x147e   :  { %v1965_v0 = vmul.f32 %v1961_v21, %v2403_v10 }
0x1480   :  { %v1967_v22 = vadd.f32 1e-12, %v1965_v0 }
0x1482   :  { %vm1975_vm14 = vweird.f32 %v1967_v22 }
0x1494   :  { %v1894_v15 = vpop.f32.mrf.mxu1 }
0x1495   :  { %v1895_v55 = vadd.f32 %v2218_v1, %v1894_v15 }
0x1497   :  { %v1898_v6 = vmul.f32 %v1895_v55, %v1895_v55 }
0x1499   :  { %v1900_v8 = vmul.f32 %v1898_v6, %v1895_v55 }
0x149b   :  { %v1902_v9 = vmul.f32 0.044715, %v1900_v8 }
0x149d   :  { %v1904_v11 = vadd.f32 %v1902_v9, %v1895_v55 }
0x149f   :  { %v1906_v12 = vmul.f32 0.7978846, %v1904_v11 }
0x14a1   :  { %2312 = vtanh.f32 %v1906_v12 }
0x14a2   :  { %2314 = vrsqrt.f32 %v1967_v22 }
0x14a7   :  { %v2313_v13 = vpop.eup %2312 }
0x14a8   :  { %v1910_v16 = vadd.f32 1.0, %v2313_v13  ;;  %v2315_v27 = vpop.eup %2314 }
0x14a9   :  { %v1970_v23 = vmul.f32 %v2315_v27, %v1967_v22 }
0x14aa   :  { %v1912_v17 = vmul.f32 0.5, %v1910_v16 }
0x14ab   :  { %v1971_v34 = vmul.f32 %v2315_v27, %v1970_v23 }
0x14ac   :  { %v1914_v7 = vmul.f32 %v1912_v17, %v1895_v55 }
0x14ad   :  { %v1972_v31 = vmul.f32 0.5, %v1971_v34 }
0x14ae   :  { %2182 = vmatmul.msk.f32.gmra.mxu3 %vm964_vm12, %v1914_v7  ;;  %vm1976_vm12 = vweird.f32 %v2315_v27 }
0x14af   :  { %v1973_v36 = vsub.f32 1.5, %v1972_v31  ;;  %vm1977_vm15 = vmor %vm1975_vm14, %vm1976_vm12 }
0x1531   :  { %v1942_v5 = vpop.f32.mrf.mxu3 }
0x1532   :  { %v1943_v3 = vadd.f32 %v2219_v39, %v1942_v5  ;;  %v1974_v39 = vmul.f32 %v2315_v27, %v1973_v36 }
0x1534   :  { %v1946_v18 = vadd.f32 %v1943_v3, %v1866_v26  ;;  %v1978_v41 = vsel %vm1977_vm15, %v2315_v27, %v1974_v39 }
0x1535   :  { %v1989_v20 = vmul.f32 %v1978_v41, %v2917_v49  ;;  %v2186_v49 = vld [vmem:[%s2977_s4 + $0x38] sm:$0xff] }
0x1536   :  { %v1950_v4 = vsel %vm28_vm0, %v1946_v18, 0.0  ;;  %2053 = vmatpush.msra.mxu2 %v2186_v49 }
0x1537   :  { %1951 = vadd.xlane.f32.xlu2 %v1950_v4 }
0x1538   :  { %2054 = vmatpush.msra.mxu2 %v2185_v54 }
0x153a   :  { %2055 = vmatpush.msra.mxu2 %v2184_v56 }
0x153c   :  { %2056 = vmatpush.msra.mxu2 %v2183_v57 }
0x15aa   :  { %v1952_v59 = vpop.xlane.xlu2 %1951 }
0x15ab   :  { %v1954_v19 = vmul.f32 %v1952_v59, %v2403_v10 }
0x15ad   :  { %v1956_v29 = vsub.f32 %v1946_v18, %v1954_v19 }
0x15af   :  { %v1958_v1 = vmul.f32 %v1956_v29, %v1956_v29 }
0x15b1   :  { %v1962_v52 = vsel %vm28_vm0, %v1958_v1, 0.0 }
0x15b2   :  { %1963 = vadd.xlane.f32.xlu2 %v1962_v52 }
0x1625   :  { %v1964_v32 = vpop.xlane.xlu2 %1963 }
0x1626   :  { %v1966_v33 = vmul.f32 %v1964_v32, %v2403_v10  ;;  %v2220_v10 = vld [vmem:[%s2976_s3 + $0xe] ss:$0 sm:$0xff] }
0x1627   :  { %v1992_v44 = vmul.f32 %v2220_v10, %v1989_v20 }
0x1628   :  { %v1968_v35 = vadd.f32 1e-12, %v1966_v33 }
0x1629   :  { %v1995_v46 = vadd.f32 %v2221_v14, %v1992_v44 }
0x162a   :  { %2316 = vrsqrt.f32 %v1968_v35  ;;  %vm1985_vm2 = vweird.f32 %v1968_v35 }
0x1630   :  { %v2317_v37 = vpop.eup %2316 }
0x1631   :  { %v1980_v38 = vmul.f32 %v2317_v37, %v1968_v35  ;;  %vm1986_vm1 = vweird.f32 %v2317_v37 }
0x1632   :  { %vm1987_vm3 = vmor %vm1985_vm2, %vm1986_vm1 }
0x1633   :  { %v1981_v60 = vmul.f32 %v2317_v37, %v1980_v38 }
0x1635   :  { %v1982_v40 = vmul.f32 0.5, %v1981_v60 }
0x1637   :  { %v1983_v42 = vsub.f32 1.5, %v1982_v40 }
0x1639   :  { %v1984_v50 = vmul.f32 %v2317_v37, %v1983_v42 }
0x163b   :  { %v1988_v62 = vsel %vm1987_vm3, %v2317_v37, %v1984_v50 }
0x163c   :  { %v1990_v43 = vmul.f32 %v1988_v62, %v1956_v29 }
0x163e   :  { %v1993_v2 = vmul.f32 %v2220_v10, %v1990_v43 }
0x1640   :  { %v1996_v45 = vadd.f32 %v2221_v14, %v1993_v2 }
0x1642   :  { %v2011_v51 = vrot.slane %v1996_v45, 7 }
0x1644   :  { %v2013_v53 = vsel %vm2012_vm4, %v2011_v51, %v1995_v46 }
0x1645   :  { %2187 = vmatmul.msk.f32.vlgmr.msra.gmra.mxu0 %vm28_vm0, %v2013_v53 }
0x16c2   :  { %v2033_v61 = vpop.f32.mrf.mxu0 }
0x16c3   :  { %v2034_v63 = vadd.f32 %v2222_v58, %v2033_v61 }
0x16c5   :  { %2318 = vtanh.f32 %v2034_v63 }
0x16cb   :  { %v2319_v48 = vpop.eup %2318 }
0x16cc   :  { %2188 = vmatmul.msk.f32.vlgmr.msra.gmra.mxu2 %vm28_vm0, %v2319_v48 }
0x174f   :  { %v2058_v26 = vpop.f32.mrf.mxu2 }
0x1750   :  { %v2059_v15 = vadd.f32 %v2223_v47, %v2058_v26 }
0x1752   :  { %2061 = vst [vmem:[#allocation2] sm:$0x3] %v2059_v15 }
0x1753   :  { %2072 = dma.vmem_to_hbm [thread:$0]  %s2068_s24, 32, %s2070_s30, [#allocation3]  }
0x1754   :  { %2345 = dma.done.wait [#allocation3], 32  }
0x1755   :  { %2346 = vsyncadd [#allocation3], 4294967264 }
0x1756   :  { %2077 = vsyncpa [#allocation3], 1 }

</bundles_post_ra>
